<compile_context>
chip_gen: v7x
topology: tpu7x:2x2x1
jax: 0.10.0
libtpu: 0.0.40
codegen_flags: <defaults>
</compile_context>

<pallas_src>
import jax
import jax.numpy as jnp
from jax.experimental import pallas as pl
from jax.experimental.pallas import tpu as pltpu


# ----------------------------- config ---------------------------------------
class Config:
    model_columns = ["user_id", "product_id", "day_of_week"]
    num_users = 20
    num_products = 63          # fc output = num_products + 1 = 64
    num_day_of_week = 7
    entity_embedding_dim = 16
    context_embedding_dim = 8
    hidden_units = 32
    num_layers = 2
    dropout = 0.0
    num_numerical_feature = None


# --------------------------- Pallas kernel ----------------------------------
def make_gru_kernel(num_layers, hidden, seq_len, batch):
    H, T, B, L = hidden, seq_len, batch, num_layers
    G = 4 * H  # gate-extended column layout: [r | z | n_x | n_h]

    def kernel(x_ref, len_ref, *rest):
        # rest layout:
        #   [w_ih0_ext, w_hh0_ext, bias0]
        #   + [w_comb_l, bias_l] for l = 1..L-1
        #   + [w_fc, b_fc, out_ref]
        w_ih0 = rest[0][...]                         # [D_in, 4H]
        w_hh0 = rest[1][...]                         # [H,    4H]
        bias0 = rest[2][...]                         # [1,    4H]
        uppers = []
        for l in range(1, L):
            w_comb = rest[3 + 2 * (l - 1)][...]      # [2H, 4H]
            bias = rest[4 + 2 * (l - 1)][...]        # [1,  4H]
            # Hoist the broadcast once per layer (JAX does not CSE it).
            uppers.append((w_comb, jnp.broadcast_to(bias, (B, G))))
        w_fc = rest[3 + 2 * (L - 1)][...]
        b_fc = rest[4 + 2 * (L - 1)][...]
        out_ref = rest[5 + 2 * (L - 1)]

        x_all = x_ref[...]                                   # [T, B, D_in]
        x_flat = x_all.reshape(T * B, x_all.shape[-1])

        # Hoisted, time-parallel input projection for layer 0 (biases folded).
        gi0_all = (jnp.dot(x_flat, w_ih0, preferred_element_type=jnp.float32)
                   + bias0)                                  # [T*B, 4H]

        lens = len_ref[...]                                  # [B, 1] int32

        def gru_step(g, h_prev):
            # g columns: [r | z | x-part of n (+b_ih_n) | h-part of n (+b_hh_n)]
            rz = jax.nn.sigmoid(g[:, :2 * H])                # one pass for r|z
            r = rz[:, :H]
            z = rz[:, H:2 * H]
            n = jnp.tanh(g[:, 2 * H:3 * H] + r * g[:, 3 * H:])
            return (1.0 - z) * n + z * h_prev

        h = [jnp.zeros((B, H), jnp.float32) for _ in range(L)]
        hfin = jnp.zeros((B, H), jnp.float32)

        # Wavefront (diagonal) schedule: wavefront step w computes layer l at
        # time t = w - l.  Within one wavefront step the per-layer updates are
        # mutually independent (layer l reads layer l-1's state from the
        # previous wavefront), so the dependent chain is T + L - 1 long.
        for wstep in range(T + L - 1):
            new_h = list(h)
            for l in range(L):
                t = wstep - l
                if not (0 <= t < T):
                    continue
                if l == 0:
                    gh = jnp.dot(h[0], w_hh0,
                                 preferred_element_type=jnp.float32)
                    g = gi0_all[t * B:(t + 1) * B, :] + gh   # static slice
                    h_new = gru_step(g, h[0])
                else:
                    w_comb, bias_b = uppers[l - 1]
                    lhs = jnp.concatenate([h[l - 1], h[l]], axis=-1)  # [B,2H]
                    g = (jnp.dot(lhs, w_comb,
                                 preferred_element_type=jnp.float32) + bias_b)
                    h_new = gru_step(g, h[l])
                new_h[l] = h_new
                if l == L - 1:
                    # Fused last-valid-step gather (equivalent to
                    # pack_padded_sequence + gather(lengths - 1)).
                    hfin = jnp.where(t < lens, h_new, hfin)
            h = new_h

        out_ref[...] = (jnp.dot(hfin, w_fc, preferred_element_type=jnp.float32)
                        + b_fc)

    return kernel


def gru_forward_pallas(x_tbd, lengths, layer_params, w_fc, b_fc,
                       num_layers, hidden):
    """x_tbd: [T, B, D_in] f32, lengths: [B] int32 -> logits [B, P+1]."""
    T, B, D_in = x_tbd.shape
    H = hidden
    P1 = w_fc.shape[1]

    # Lane/sublane-dense padding (sliced off at the end).  NOTE: padded batch
    # rows develop non-zero hidden state (bias-only input) but their padded
    # lengths are 0 so they never reach hfin, and they are sliced off here.
    B_pad = ((B + 7) // 8) * 8
    P1_pad = ((P1 + 127) // 128) * 128

    x_p = jnp.pad(x_tbd, ((0, 0), (0, B_pad - B), (0, 0)))
    len_p = jnp.pad(lengths.astype(jnp.int32), (0, B_pad - B)).reshape(B_pad, 1)
    w_fc_p = jnp.pad(w_fc, ((0, 0), (0, P1_pad - P1)))
    b_fc_p = jnp.pad(b_fc, ((0, 0), (0, P1_pad - P1)))

    zHH = jnp.zeros((H, H), jnp.float32)

    args = [x_p, len_p]

    # Layer 0: x-path / h-path kept separate (x-path is hoisted over time),
    # both extended to the 4H gate layout [r | z | n_x | n_h].
    #   bias0 = [b_ih_rz + b_hh_rz, b_ih_n, b_hh_n] so b_hh_n lands inside the
    #   r * (...) term via the n_h column.
    w_ih0, w_hh0, b_ih0, b_hh0 = layer_params[0]
    d0 = w_ih0.shape[0]
    w_ih0_ext = jnp.concatenate(
        [w_ih0, jnp.zeros((d0, H), jnp.float32)], axis=1)             # [D_in,4H]
    w_hh0_ext = jnp.concatenate(
        [w_hh0[:, :2 * H], zHH, w_hh0[:, 2 * H:]], axis=1)            # [H,  4H]
    bias0 = jnp.concatenate(
        [b_ih0[:, :2 * H] + b_hh0[:, :2 * H],
         b_ih0[:, 2 * H:], b_hh0[:, 2 * H:]], axis=1)                 # [1,  4H]
    args += [w_ih0_ext, w_hh0_ext, bias0]

    # Layers >= 1: one fused per-step matmul.
    #   LHS = [h_below | h_prev]  (2H)
    #   RHS = [[W_ih_rz, W_ih_n, 0     ],
    #          [W_hh_rz, 0,      W_hh_n]]   -> [2H, 4H]
    for l in range(1, num_layers):
        w_ih, w_hh, b_ih, b_hh = layer_params[l]
        top = jnp.concatenate([w_ih[:, :2 * H], w_ih[:, 2 * H:], zHH], axis=1)
        bot = jnp.concatenate([w_hh[:, :2 * H], zHH, w_hh[:, 2 * H:]], axis=1)
        w_comb = jnp.concatenate([top, bot], axis=0)                  # [2H, 4H]
        bias = jnp.concatenate(
            [b_ih[:, :2 * H] + b_hh[:, :2 * H],
             b_ih[:, 2 * H:], b_hh[:, 2 * H:]], axis=1)               # [1,  4H]
        args += [w_comb, bias]

    args += [w_fc_p, b_fc_p]

    kernel = make_gru_kernel(num_layers, H, T, B_pad)

    out = pl.pallas_call(
        kernel,
        out_shape=jax.ShapeDtypeStruct((B_pad, P1_pad), jnp.float32),
        compiler_params=pltpu.CompilerParams(
            vmem_limit_bytes=32 * 1024 * 1024),
    )(*args)
    return out[:B, :P1]


# --------------------------- plain-JAX reference ----------------------------
def gru_forward_ref(x_tbd, lengths, layer_params, w_fc, b_fc,
                    num_layers, hidden):
    T, B, _ = x_tbd.shape
    H = hidden
    h = [jnp.zeros((B, H), jnp.float32) for _ in range(num_layers)]
    hfin = jnp.zeros((B, H), jnp.float32)
    for t in range(T):
        inp = x_tbd[t]
        for l in range(num_layers):
            w_ih, w_hh, b_ih, b_hh = layer_params[l]
            gi = inp @ w_ih + b_ih
            gh = h[l] @ w_hh + b_hh
            r = jax.nn.sigmoid(gi[:, :H] + gh[:, :H])
            z = jax.nn.sigmoid(gi[:, H:2 * H] + gh[:, H:2 * H])
            n = jnp.tanh(gi[:, 2 * H:] + r * gh[:, 2 * H:])
            h[l] = (1.0 - z) * n + z * h[l]
            inp = h[l]
        mask = (t < lengths)[:, None]
        hfin = jnp.where(mask, inp, hfin)
    return hfin @ w_fc + b_fc


# ------------------------------- main ---------------------------------------
if __name__ == "__main__":
    cfg = Config()
    B, T = 4, 8
    H = cfg.hidden_units
    L = cfg.num_layers
    D_in = (cfg.entity_embedding_dim * 2 + cfg.context_embedding_dim)  # 40
    P1 = cfg.num_products + 1

    key = jax.random.PRNGKey(0)
    ks = jax.random.split(key, 16)

    # embedding tables (deterministic random init)
    user_emb = 0.1 * jax.random.normal(ks[0], (cfg.num_users, cfg.entity_embedding_dim), jnp.float32)
    prod_emb = 0.1 * jax.random.normal(ks[1], (cfg.num_products, cfg.entity_embedding_dim), jnp.float32)
    dow_emb = 0.1 * jax.random.normal(ks[2], (cfg.num_day_of_week, cfg.context_embedding_dim), jnp.float32)

    # GRU parameters (PyTorch layout transposed: W stored as [in, 3H])
    layer_params = []
    for l in range(L):
        in_dim = D_in if l == 0 else H
        k = jax.random.split(ks[3 + l], 4)
        scale = 1.0 / jnp.sqrt(jnp.float32(H))
        w_ih = jax.random.uniform(k[0], (in_dim, 3 * H), jnp.float32, -scale, scale)
        w_hh = jax.random.uniform(k[1], (H, 3 * H), jnp.float32, -scale, scale)
        b_ih = jax.random.uniform(k[2], (1, 3 * H), jnp.float32, -scale, scale)
        b_hh = jax.random.uniform(k[3], (1, 3 * H), jnp.float32, -scale, scale)
        layer_params.append((w_ih, w_hh, b_ih, b_hh))

    w_fc = 0.1 * jax.random.normal(ks[8], (H, P1), jnp.float32)
    b_fc = 0.01 * jax.random.normal(ks[9], (1, P1), jnp.float32)

    # inputs: index sequences + variable lengths
    user_id = jax.random.randint(ks[10], (B, T), 0, cfg.num_users)
    product_id = jax.random.randint(ks[11], (B, T), 0, cfg.num_products)
    day_of_week = jax.random.randint(ks[12], (B, T), 0, cfg.num_day_of_week)
    lengths = jnp.array([8, 5, 3, 6], dtype=jnp.int32)

    # glue: embedding lookups + concat (torch.cat(embeddings, dim=-1))
    rnn_input = jnp.concatenate(
        [jnp.take(user_emb, user_id, axis=0),
         jnp.take(prod_emb, product_id, axis=0),
         jnp.take(dow_emb, day_of_week, axis=0)],
        axis=-1)                                   # [B, T, D_in]
    x_tbd = jnp.transpose(rnn_input, (1, 0, 2))    # time-major [T, B, D_in]

    logits = gru_forward_pallas(x_tbd, lengths, layer_params, w_fc, b_fc, L, H)
    logits = jax.block_until_ready(logits)

    ref = gru_forward_ref(x_tbd, lengths, layer_params, w_fc, b_fc, L, H)
    assert logits.shape == (B, P1)
    assert jnp.allclose(logits, ref, atol=1e-4, rtol=1e-4), (
        f"mismatch: max abs err {jnp.max(jnp.abs(logits - ref))}")

    print("KERNEL_OK")
</pallas_src>

<mosaic_0001>
module attributes {stable_mosaic.version = 11 : i64} {
  func.func @kernel(%arg0: memref<8x8x40xf32, #tpu.memory_space<vmem>>, %arg1: memref<8x1xi32, #tpu.memory_space<vmem>>, %arg2: memref<40x128xf32, #tpu.memory_space<vmem>>, %arg3: memref<32x128xf32, #tpu.memory_space<vmem>>, %arg4: memref<1x128xf32, #tpu.memory_space<vmem>>, %arg5: memref<64x128xf32, #tpu.memory_space<vmem>>, %arg6: memref<1x128xf32, #tpu.memory_space<vmem>>, %arg7: memref<32x128xf32, #tpu.memory_space<vmem>>, %arg8: memref<1x128xf32, #tpu.memory_space<vmem>>, %arg9: memref<8x128xf32, #tpu.memory_space<vmem>>) attributes {dimension_semantics = [], scalar_prefetch = 0 : i64, scratch_operands = 0 : i64, tpu.core_type = #tpu.core_type<tc>} {
    %c0 = arith.constant 0 : index
    %c0_0 = arith.constant 0 : index
    %0 = vector.load %arg2[%c0, %c0_0] : memref<40x128xf32, #tpu.memory_space<vmem>>, vector<40x128xf32>
    %c0_1 = arith.constant 0 : index
    %c0_2 = arith.constant 0 : index
    %1 = vector.load %arg3[%c0_1, %c0_2] : memref<32x128xf32, #tpu.memory_space<vmem>>, vector<32x128xf32>
    %c0_3 = arith.constant 0 : index
    %c0_4 = arith.constant 0 : index
    %2 = vector.load %arg4[%c0_3, %c0_4] : memref<1x128xf32, #tpu.memory_space<vmem>>, vector<1x128xf32>
    %c0_5 = arith.constant 0 : index
    %c0_6 = arith.constant 0 : index
    %3 = vector.load %arg5[%c0_5, %c0_6] : memref<64x128xf32, #tpu.memory_space<vmem>>, vector<64x128xf32>
    %c0_7 = arith.constant 0 : index
    %c0_8 = arith.constant 0 : index
    %4 = vector.load %arg6[%c0_7, %c0_8] : memref<1x128xf32, #tpu.memory_space<vmem>>, vector<1x128xf32>
    %5 = vector.shape_cast %4 : vector<1x128xf32> to vector<1x128xf32>
    %6 = vector.broadcast %5 : vector<1x128xf32> to vector<8x128xf32>
    %c0_9 = arith.constant 0 : index
    %c0_10 = arith.constant 0 : index
    %7 = vector.load %arg7[%c0_9, %c0_10] : memref<32x128xf32, #tpu.memory_space<vmem>>, vector<32x128xf32>
    %c0_11 = arith.constant 0 : index
    %c0_12 = arith.constant 0 : index
    %8 = vector.load %arg8[%c0_11, %c0_12] : memref<1x128xf32, #tpu.memory_space<vmem>>, vector<1x128xf32>
    %c0_13 = arith.constant 0 : index
    %c0_14 = arith.constant 0 : index
    %c0_15 = arith.constant 0 : index
    %9 = vector.load %arg0[%c0_13, %c0_14, %c0_15] : memref<8x8x40xf32, #tpu.memory_space<vmem>>, vector<8x8x40xf32>
    %10 = vector.shape_cast %9 : vector<8x8x40xf32> to vector<64x40xf32>
    %cst = arith.constant dense<0.000000e+00> : vector<64x128xf32>
    %11 = tpu.matmul %10, %0, %cst {dimension_numbers = #tpu.dot_dimension_numbers<[1], [0], [0], [1], [0, 0, 1, 1], [], []>} : vector<64x40xf32>, vector<40x128xf32>, vector<64x128xf32> -> vector<64x128xf32>
    %12 = vector.broadcast %2 : vector<1x128xf32> to vector<64x128xf32>
    %13 = arith.addf %11, %12 : vector<64x128xf32>
    %c0_16 = arith.constant 0 : index
    %c0_17 = arith.constant 0 : index
    %14 = vector.load %arg1[%c0_16, %c0_17] : memref<8x1xi32, #tpu.memory_space<vmem>>, vector<8x1xi32>
    %cst_18 = arith.constant 0.000000e+00 : f32
    %15 = vector.broadcast %cst_18 : f32 to vector<8x32xf32>
    %cst_19 = arith.constant 0.000000e+00 : f32
    %16 = vector.broadcast %cst_19 : f32 to vector<8x32xf32>
    %cst_20 = arith.constant 0.000000e+00 : f32
    %17 = vector.broadcast %cst_20 : f32 to vector<8x32xf32>
    %cst_21 = arith.constant dense<0.000000e+00> : vector<8x128xf32>
    %18 = tpu.matmul %15, %1, %cst_21 {dimension_numbers = #tpu.dot_dimension_numbers<[1], [0], [0], [1], [0, 0, 1, 1], [], []>} : vector<8x32xf32>, vector<32x128xf32>, vector<8x128xf32> -> vector<8x128xf32>
    %19 = vector.extract_strided_slice %13 {offsets = [0, 0], sizes = [8, 128], strides = [1, 1]} : vector<64x128xf32> to vector<8x128xf32>
    %20 = arith.addf %19, %18 : vector<8x128xf32>
    %21 = vector.extract_strided_slice %20 {offsets = [0, 0], sizes = [8, 64], strides = [1, 1]} : vector<8x128xf32> to vector<8x64xf32>
    %22 = arith.negf %21 : vector<8x64xf32>
    %23 = math.exp %22 : vector<8x64xf32>
    %cst_22 = arith.constant 1.000000e+00 : f32
    %24 = vector.broadcast %cst_22 : f32 to vector<8x64xf32>
    %25 = arith.addf %24, %23 : vector<8x64xf32>
    %26 = arith.divf %24, %25 : vector<8x64xf32>
    %27 = vector.extract_strided_slice %26 {offsets = [0, 0], sizes = [8, 32], strides = [1, 1]} : vector<8x64xf32> to vector<8x32xf32>
    %28 = vector.extract_strided_slice %26 {offsets = [0, 32], sizes = [8, 32], strides = [1, 1]} : vector<8x64xf32> to vector<8x32xf32>
    %29 = vector.extract_strided_slice %20 {offsets = [0, 64], sizes = [8, 32], strides = [1, 1]} : vector<8x128xf32> to vector<8x32xf32>
    %30 = vector.extract_strided_slice %20 {offsets = [0, 96], sizes = [8, 32], strides = [1, 1]} : vector<8x128xf32> to vector<8x32xf32>
    %31 = arith.mulf %27, %30 : vector<8x32xf32>
    %32 = arith.addf %29, %31 : vector<8x32xf32>
    %33 = math.tanh %32 : vector<8x32xf32>
    %cst_23 = arith.constant 1.000000e+00 : f32
    %34 = vector.broadcast %cst_23 : f32 to vector<8x32xf32>
    %35 = arith.subf %34, %28 : vector<8x32xf32>
    %36 = arith.mulf %35, %33 : vector<8x32xf32>
    %37 = arith.mulf %28, %15 : vector<8x32xf32>
    %38 = arith.addf %36, %37 : vector<8x32xf32>
    %cst_24 = arith.constant dense<0.000000e+00> : vector<8x128xf32>
    %39 = tpu.matmul %38, %1, %cst_24 {dimension_numbers = #tpu.dot_dimension_numbers<[1], [0], [0], [1], [0, 0, 1, 1], [], []>} : vector<8x32xf32>, vector<32x128xf32>, vector<8x128xf32> -> vector<8x128xf32>
    %40 = vector.extract_strided_slice %13 {offsets = [8, 0], sizes = [8, 128], strides = [1, 1]} : vector<64x128xf32> to vector<8x128xf32>
    %41 = arith.addf %40, %39 : vector<8x128xf32>
    %42 = vector.extract_strided_slice %41 {offsets = [0, 0], sizes = [8, 64], strides = [1, 1]} : vector<8x128xf32> to vector<8x64xf32>
    %43 = arith.negf %42 : vector<8x64xf32>
    %44 = math.exp %43 : vector<8x64xf32>
    %cst_25 = arith.constant 1.000000e+00 : f32
    %45 = vector.broadcast %cst_25 : f32 to vector<8x64xf32>
    %46 = arith.addf %45, %44 : vector<8x64xf32>
    %47 = arith.divf %45, %46 : vector<8x64xf32>
    %48 = vector.extract_strided_slice %47 {offsets = [0, 0], sizes = [8, 32], strides = [1, 1]} : vector<8x64xf32> to vector<8x32xf32>
    %49 = vector.extract_strided_slice %47 {offsets = [0, 32], sizes = [8, 32], strides = [1, 1]} : vector<8x64xf32> to vector<8x32xf32>
    %50 = vector.extract_strided_slice %41 {offsets = [0, 64], sizes = [8, 32], strides = [1, 1]} : vector<8x128xf32> to vector<8x32xf32>
    %51 = vector.extract_strided_slice %41 {offsets = [0, 96], sizes = [8, 32], strides = [1, 1]} : vector<8x128xf32> to vector<8x32xf32>
    %52 = arith.mulf %48, %51 : vector<8x32xf32>
    %53 = arith.addf %50, %52 : vector<8x32xf32>
    %54 = math.tanh %53 : vector<8x32xf32>
    %cst_26 = arith.constant 1.000000e+00 : f32
    %55 = vector.broadcast %cst_26 : f32 to vector<8x32xf32>
    %56 = arith.subf %55, %49 : vector<8x32xf32>
    %57 = arith.mulf %56, %54 : vector<8x32xf32>
    %58 = arith.mulf %49, %38 : vector<8x32xf32>
    %59 = arith.addf %57, %58 : vector<8x32xf32>
    %60 = tpu.concatenate %38, %16 in 1 : vector<8x32xf32>, vector<8x32xf32> -> vector<8x64xf32>
    %cst_27 = arith.constant dense<0.000000e+00> : vector<8x128xf32>
    %61 = tpu.matmul %60, %3, %cst_27 {dimension_numbers = #tpu.dot_dimension_numbers<[1], [0], [0], [1], [0, 0, 1, 1], [], []>} : vector<8x64xf32>, vector<64x128xf32>, vector<8x128xf32> -> vector<8x128xf32>
    %62 = arith.addf %61, %6 : vector<8x128xf32>
    %63 = vector.extract_strided_slice %62 {offsets = [0, 0], sizes = [8, 64], strides = [1, 1]} : vector<8x128xf32> to vector<8x64xf32>
    %64 = arith.negf %63 : vector<8x64xf32>
    %65 = math.exp %64 : vector<8x64xf32>
    %cst_28 = arith.constant 1.000000e+00 : f32
    %66 = vector.broadcast %cst_28 : f32 to vector<8x64xf32>
    %67 = arith.addf %66, %65 : vector<8x64xf32>
    %68 = arith.divf %66, %67 : vector<8x64xf32>
    %69 = vector.extract_strided_slice %68 {offsets = [0, 0], sizes = [8, 32], strides = [1, 1]} : vector<8x64xf32> to vector<8x32xf32>
    %70 = vector.extract_strided_slice %68 {offsets = [0, 32], sizes = [8, 32], strides = [1, 1]} : vector<8x64xf32> to vector<8x32xf32>
    %71 = vector.extract_strided_slice %62 {offsets = [0, 64], sizes = [8, 32], strides = [1, 1]} : vector<8x128xf32> to vector<8x32xf32>
    %72 = vector.extract_strided_slice %62 {offsets = [0, 96], sizes = [8, 32], strides = [1, 1]} : vector<8x128xf32> to vector<8x32xf32>
    %73 = arith.mulf %69, %72 : vector<8x32xf32>
    %74 = arith.addf %71, %73 : vector<8x32xf32>
    %75 = math.tanh %74 : vector<8x32xf32>
    %cst_29 = arith.constant 1.000000e+00 : f32
    %76 = vector.broadcast %cst_29 : f32 to vector<8x32xf32>
    %77 = arith.subf %76, %70 : vector<8x32xf32>
    %78 = arith.mulf %77, %75 : vector<8x32xf32>
    %79 = arith.mulf %70, %16 : vector<8x32xf32>
    %80 = arith.addf %78, %79 : vector<8x32xf32>
    %c0_i32 = arith.constant 0 : i32
    %81 = vector.broadcast %c0_i32 : i32 to vector<8x1xi32>
    %82 = arith.cmpi sgt, %14, %81 : vector<8x1xi32>
    %83 = vector.shape_cast %82 : vector<8x1xi1> to vector<8x1xi1>
    %84 = vector.broadcast %83 : vector<8x1xi1> to vector<8x32xi1>
    %85 = arith.select %84, %80, %17 : vector<8x32xi1>, vector<8x32xf32>
    %cst_30 = arith.constant dense<0.000000e+00> : vector<8x128xf32>
    %86 = tpu.matmul %59, %1, %cst_30 {dimension_numbers = #tpu.dot_dimension_numbers<[1], [0], [0], [1], [0, 0, 1, 1], [], []>} : vector<8x32xf32>, vector<32x128xf32>, vector<8x128xf32> -> vector<8x128xf32>
    %87 = vector.extract_strided_slice %13 {offsets = [16, 0], sizes = [8, 128], strides = [1, 1]} : vector<64x128xf32> to vector<8x128xf32>
    %88 = arith.addf %87, %86 : vector<8x128xf32>
    %89 = vector.extract_strided_slice %88 {offsets = [0, 0], sizes = [8, 64], strides = [1, 1]} : vector<8x128xf32> to vector<8x64xf32>
    %90 = arith.negf %89 : vector<8x64xf32>
    %91 = math.exp %90 : vector<8x64xf32>
    %cst_31 = arith.constant 1.000000e+00 : f32
    %92 = vector.broadcast %cst_31 : f32 to vector<8x64xf32>
    %93 = arith.addf %92, %91 : vector<8x64xf32>
    %94 = arith.divf %92, %93 : vector<8x64xf32>
    %95 = vector.extract_strided_slice %94 {offsets = [0, 0], sizes = [8, 32], strides = [1, 1]} : vector<8x64xf32> to vector<8x32xf32>
    %96 = vector.extract_strided_slice %94 {offsets = [0, 32], sizes = [8, 32], strides = [1, 1]} : vector<8x64xf32> to vector<8x32xf32>
    %97 = vector.extract_strided_slice %88 {offsets = [0, 64], sizes = [8, 32], strides = [1, 1]} : vector<8x128xf32> to vector<8x32xf32>
    %98 = vector.extract_strided_slice %88 {offsets = [0, 96], sizes = [8, 32], strides = [1, 1]} : vector<8x128xf32> to vector<8x32xf32>
    %99 = arith.mulf %95, %98 : vector<8x32xf32>
    %100 = arith.addf %97, %99 : vector<8x32xf32>
    %101 = math.tanh %100 : vector<8x32xf32>
    %cst_32 = arith.constant 1.000000e+00 : f32
    %102 = vector.broadcast %cst_32 : f32 to vector<8x32xf32>
    %103 = arith.subf %102, %96 : vector<8x32xf32>
    %104 = arith.mulf %103, %101 : vector<8x32xf32>
    %105 = arith.mulf %96, %59 : vector<8x32xf32>
    %106 = arith.addf %104, %105 : vector<8x32xf32>
    %107 = tpu.concatenate %59, %80 in 1 : vector<8x32xf32>, vector<8x32xf32> -> vector<8x64xf32>
    %cst_33 = arith.constant dense<0.000000e+00> : vector<8x128xf32>
    %108 = tpu.matmul %107, %3, %cst_33 {dimension_numbers = #tpu.dot_dimension_numbers<[1], [0], [0], [1], [0, 0, 1, 1], [], []>} : vector<8x64xf32>, vector<64x128xf32>, vector<8x128xf32> -> vector<8x128xf32>
    %109 = arith.addf %108, %6 : vector<8x128xf32>
    %110 = vector.extract_strided_slice %109 {offsets = [0, 0], sizes = [8, 64], strides = [1, 1]} : vector<8x128xf32> to vector<8x64xf32>
    %111 = arith.negf %110 : vector<8x64xf32>
    %112 = math.exp %111 : vector<8x64xf32>
    %cst_34 = arith.constant 1.000000e+00 : f32
    %113 = vector.broadcast %cst_34 : f32 to vector<8x64xf32>
    %114 = arith.addf %113, %112 : vector<8x64xf32>
    %115 = arith.divf %113, %114 : vector<8x64xf32>
    %116 = vector.extract_strided_slice %115 {offsets = [0, 0], sizes = [8, 32], strides = [1, 1]} : vector<8x64xf32> to vector<8x32xf32>
    %117 = vector.extract_strided_slice %115 {offsets = [0, 32], sizes = [8, 32], strides = [1, 1]} : vector<8x64xf32> to vector<8x32xf32>
    %118 = vector.extract_strided_slice %109 {offsets = [0, 64], sizes = [8, 32], strides = [1, 1]} : vector<8x128xf32> to vector<8x32xf32>
    %119 = vector.extract_strided_slice %109 {offsets = [0, 96], sizes = [8, 32], strides = [1, 1]} : vector<8x128xf32> to vector<8x32xf32>
    %120 = arith.mulf %116, %119 : vector<8x32xf32>
    %121 = arith.addf %118, %120 : vector<8x32xf32>
    %122 = math.tanh %121 : vector<8x32xf32>
    %cst_35 = arith.constant 1.000000e+00 : f32
    %123 = vector.broadcast %cst_35 : f32 to vector<8x32xf32>
    %124 = arith.subf %123, %117 : vector<8x32xf32>
    %125 = arith.mulf %124, %122 : vector<8x32xf32>
    %126 = arith.mulf %117, %80 : vector<8x32xf32>
    %127 = arith.addf %125, %126 : vector<8x32xf32>
    %c1_i32 = arith.constant 1 : i32
    %128 = vector.broadcast %c1_i32 : i32 to vector<8x1xi32>
    %129 = arith.cmpi sgt, %14, %128 : vector<8x1xi32>
    %130 = vector.shape_cast %129 : vector<8x1xi1> to vector<8x1xi1>
    %131 = vector.broadcast %130 : vector<8x1xi1> to vector<8x32xi1>
    %132 = arith.select %131, %127, %85 : vector<8x32xi1>, vector<8x32xf32>
    %cst_36 = arith.constant dense<0.000000e+00> : vector<8x128xf32>
    %133 = tpu.matmul %106, %1, %cst_36 {dimension_numbers = #tpu.dot_dimension_numbers<[1], [0], [0], [1], [0, 0, 1, 1], [], []>} : vector<8x32xf32>, vector<32x128xf32>, vector<8x128xf32> -> vector<8x128xf32>
    %134 = vector.extract_strided_slice %13 {offsets = [24, 0], sizes = [8, 128], strides = [1, 1]} : vector<64x128xf32> to vector<8x128xf32>
    %135 = arith.addf %134, %133 : vector<8x128xf32>
    %136 = vector.extract_strided_slice %135 {offsets = [0, 0], sizes = [8, 64], strides = [1, 1]} : vector<8x128xf32> to vector<8x64xf32>
    %137 = arith.negf %136 : vector<8x64xf32>
    %138 = math.exp %137 : vector<8x64xf32>
    %cst_37 = arith.constant 1.000000e+00 : f32
    %139 = vector.broadcast %cst_37 : f32 to vector<8x64xf32>
    %140 = arith.addf %139, %138 : vector<8x64xf32>
    %141 = arith.divf %139, %140 : vector<8x64xf32>
    %142 = vector.extract_strided_slice %141 {offsets = [0, 0], sizes = [8, 32], strides = [1, 1]} : vector<8x64xf32> to vector<8x32xf32>
    %143 = vector.extract_strided_slice %141 {offsets = [0, 32], sizes = [8, 32], strides = [1, 1]} : vector<8x64xf32> to vector<8x32xf32>
    %144 = vector.extract_strided_slice %135 {offsets = [0, 64], sizes = [8, 32], strides = [1, 1]} : vector<8x128xf32> to vector<8x32xf32>
    %145 = vector.extract_strided_slice %135 {offsets = [0, 96], sizes = [8, 32], strides = [1, 1]} : vector<8x128xf32> to vector<8x32xf32>
    %146 = arith.mulf %142, %145 : vector<8x32xf32>
    %147 = arith.addf %144, %146 : vector<8x32xf32>
    %148 = math.tanh %147 : vector<8x32xf32>
    %cst_38 = arith.constant 1.000000e+00 : f32
    %149 = vector.broadcast %cst_38 : f32 to vector<8x32xf32>
    %150 = arith.subf %149, %143 : vector<8x32xf32>
    %151 = arith.mulf %150, %148 : vector<8x32xf32>
    %152 = arith.mulf %143, %106 : vector<8x32xf32>
    %153 = arith.addf %151, %152 : vector<8x32xf32>
    %154 = tpu.concatenate %106, %127 in 1 : vector<8x32xf32>, vector<8x32xf32> -> vector<8x64xf32>
    %cst_39 = arith.constant dense<0.000000e+00> : vector<8x128xf32>
    %155 = tpu.matmul %154, %3, %cst_39 {dimension_numbers = #tpu.dot_dimension_numbers<[1], [0], [0], [1], [0, 0, 1, 1], [], []>} : vector<8x64xf32>, vector<64x128xf32>, vector<8x128xf32> -> vector<8x128xf32>
    %156 = arith.addf %155, %6 : vector<8x128xf32>
    %157 = vector.extract_strided_slice %156 {offsets = [0, 0], sizes = [8, 64], strides = [1, 1]} : vector<8x128xf32> to vector<8x64xf32>
    %158 = arith.negf %157 : vector<8x64xf32>
    %159 = math.exp %158 : vector<8x64xf32>
    %cst_40 = arith.constant 1.000000e+00 : f32
    %160 = vector.broadcast %cst_40 : f32 to vector<8x64xf32>
    %161 = arith.addf %160, %159 : vector<8x64xf32>
    %162 = arith.divf %160, %161 : vector<8x64xf32>
    %163 = vector.extract_strided_slice %162 {offsets = [0, 0], sizes = [8, 32], strides = [1, 1]} : vector<8x64xf32> to vector<8x32xf32>
    %164 = vector.extract_strided_slice %162 {offsets = [0, 32], sizes = [8, 32], strides = [1, 1]} : vector<8x64xf32> to vector<8x32xf32>
    %165 = vector.extract_strided_slice %156 {offsets = [0, 64], sizes = [8, 32], strides = [1, 1]} : vector<8x128xf32> to vector<8x32xf32>
    %166 = vector.extract_strided_slice %156 {offsets = [0, 96], sizes = [8, 32], strides = [1, 1]} : vector<8x128xf32> to vector<8x32xf32>
    %167 = arith.mulf %163, %166 : vector<8x32xf32>
    %168 = arith.addf %165, %167 : vector<8x32xf32>
    %169 = math.tanh %168 : vector<8x32xf32>
    %cst_41 = arith.constant 1.000000e+00 : f32
    %170 = vector.broadcast %cst_41 : f32 to vector<8x32xf32>
    %171 = arith.subf %170, %164 : vector<8x32xf32>
    %172 = arith.mulf %171, %169 : vector<8x32xf32>
    %173 = arith.mulf %164, %127 : vector<8x32xf32>
    %174 = arith.addf %172, %173 : vector<8x32xf32>
    %c2_i32 = arith.constant 2 : i32
    %175 = vector.broadcast %c2_i32 : i32 to vector<8x1xi32>
    %176 = arith.cmpi sgt, %14, %175 : vector<8x1xi32>
    %177 = vector.shape_cast %176 : vector<8x1xi1> to vector<8x1xi1>
    %178 = vector.broadcast %177 : vector<8x1xi1> to vector<8x32xi1>
    %179 = arith.select %178, %174, %132 : vector<8x32xi1>, vector<8x32xf32>
    %cst_42 = arith.constant dense<0.000000e+00> : vector<8x128xf32>
    %180 = tpu.matmul %153, %1, %cst_42 {dimension_numbers = #tpu.dot_dimension_numbers<[1], [0], [0], [1], [0, 0, 1, 1], [], []>} : vector<8x32xf32>, vector<32x128xf32>, vector<8x128xf32> -> vector<8x128xf32>
    %181 = vector.extract_strided_slice %13 {offsets = [32, 0], sizes = [8, 128], strides = [1, 1]} : vector<64x128xf32> to vector<8x128xf32>
    %182 = arith.addf %181, %180 : vector<8x128xf32>
    %183 = vector.extract_strided_slice %182 {offsets = [0, 0], sizes = [8, 64], strides = [1, 1]} : vector<8x128xf32> to vector<8x64xf32>
    %184 = arith.negf %183 : vector<8x64xf32>
    %185 = math.exp %184 : vector<8x64xf32>
    %cst_43 = arith.constant 1.000000e+00 : f32
    %186 = vector.broadcast %cst_43 : f32 to vector<8x64xf32>
    %187 = arith.addf %186, %185 : vector<8x64xf32>
    %188 = arith.divf %186, %187 : vector<8x64xf32>
    %189 = vector.extract_strided_slice %188 {offsets = [0, 0], sizes = [8, 32], strides = [1, 1]} : vector<8x64xf32> to vector<8x32xf32>
    %190 = vector.extract_strided_slice %188 {offsets = [0, 32], sizes = [8, 32], strides = [1, 1]} : vector<8x64xf32> to vector<8x32xf32>
    %191 = vector.extract_strided_slice %182 {offsets = [0, 64], sizes = [8, 32], strides = [1, 1]} : vector<8x128xf32> to vector<8x32xf32>
    %192 = vector.extract_strided_slice %182 {offsets = [0, 96], sizes = [8, 32], strides = [1, 1]} : vector<8x128xf32> to vector<8x32xf32>
    %193 = arith.mulf %189, %192 : vector<8x32xf32>
    %194 = arith.addf %191, %193 : vector<8x32xf32>
    %195 = math.tanh %194 : vector<8x32xf32>
    %cst_44 = arith.constant 1.000000e+00 : f32
    %196 = vector.broadcast %cst_44 : f32 to vector<8x32xf32>
    %197 = arith.subf %196, %190 : vector<8x32xf32>
    %198 = arith.mulf %197, %195 : vector<8x32xf32>
    %199 = arith.mulf %190, %153 : vector<8x32xf32>
    %200 = arith.addf %198, %199 : vector<8x32xf32>
    %201 = tpu.concatenate %153, %174 in 1 : vector<8x32xf32>, vector<8x32xf32> -> vector<8x64xf32>
    %cst_45 = arith.constant dense<0.000000e+00> : vector<8x128xf32>
    %202 = tpu.matmul %201, %3, %cst_45 {dimension_numbers = #tpu.dot_dimension_numbers<[1], [0], [0], [1], [0, 0, 1, 1], [], []>} : vector<8x64xf32>, vector<64x128xf32>, vector<8x128xf32> -> vector<8x128xf32>
    %203 = arith.addf %202, %6 : vector<8x128xf32>
    %204 = vector.extract_strided_slice %203 {offsets = [0, 0], sizes = [8, 64], strides = [1, 1]} : vector<8x128xf32> to vector<8x64xf32>
    %205 = arith.negf %204 : vector<8x64xf32>
    %206 = math.exp %205 : vector<8x64xf32>
    %cst_46 = arith.constant 1.000000e+00 : f32
    %207 = vector.broadcast %cst_46 : f32 to vector<8x64xf32>
    %208 = arith.addf %207, %206 : vector<8x64xf32>
    %209 = arith.divf %207, %208 : vector<8x64xf32>
    %210 = vector.extract_strided_slice %209 {offsets = [0, 0], sizes = [8, 32], strides = [1, 1]} : vector<8x64xf32> to vector<8x32xf32>
    %211 = vector.extract_strided_slice %209 {offsets = [0, 32], sizes = [8, 32], strides = [1, 1]} : vector<8x64xf32> to vector<8x32xf32>
    %212 = vector.extract_strided_slice %203 {offsets = [0, 64], sizes = [8, 32], strides = [1, 1]} : vector<8x128xf32> to vector<8x32xf32>
    %213 = vector.extract_strided_slice %203 {offsets = [0, 96], sizes = [8, 32], strides = [1, 1]} : vector<8x128xf32> to vector<8x32xf32>
    %214 = arith.mulf %210, %213 : vector<8x32xf32>
    %215 = arith.addf %212, %214 : vector<8x32xf32>
    %216 = math.tanh %215 : vector<8x32xf32>
    %cst_47 = arith.constant 1.000000e+00 : f32
    %217 = vector.broadcast %cst_47 : f32 to vector<8x32xf32>
    %218 = arith.subf %217, %211 : vector<8x32xf32>
    %219 = arith.mulf %218, %216 : vector<8x32xf32>
    %220 = arith.mulf %211, %174 : vector<8x32xf32>
    %221 = arith.addf %219, %220 : vector<8x32xf32>
    %c3_i32 = arith.constant 3 : i32
    %222 = vector.broadcast %c3_i32 : i32 to vector<8x1xi32>
    %223 = arith.cmpi sgt, %14, %222 : vector<8x1xi32>
    %224 = vector.shape_cast %223 : vector<8x1xi1> to vector<8x1xi1>
    %225 = vector.broadcast %224 : vector<8x1xi1> to vector<8x32xi1>
    %226 = arith.select %225, %221, %179 : vector<8x32xi1>, vector<8x32xf32>
    %cst_48 = arith.constant dense<0.000000e+00> : vector<8x128xf32>
    %227 = tpu.matmul %200, %1, %cst_48 {dimension_numbers = #tpu.dot_dimension_numbers<[1], [0], [0], [1], [0, 0, 1, 1], [], []>} : vector<8x32xf32>, vector<32x128xf32>, vector<8x128xf32> -> vector<8x128xf32>
    %228 = vector.extract_strided_slice %13 {offsets = [40, 0], sizes = [8, 128], strides = [1, 1]} : vector<64x128xf32> to vector<8x128xf32>
    %229 = arith.addf %228, %227 : vector<8x128xf32>
    %230 = vector.extract_strided_slice %229 {offsets = [0, 0], sizes = [8, 64], strides = [1, 1]} : vector<8x128xf32> to vector<8x64xf32>
    %231 = arith.negf %230 : vector<8x64xf32>
    %232 = math.exp %231 : vector<8x64xf32>
    %cst_49 = arith.constant 1.000000e+00 : f32
    %233 = vector.broadcast %cst_49 : f32 to vector<8x64xf32>
    %234 = arith.addf %233, %232 : vector<8x64xf32>
    %235 = arith.divf %233, %234 : vector<8x64xf32>
    %236 = vector.extract_strided_slice %235 {offsets = [0, 0], sizes = [8, 32], strides = [1, 1]} : vector<8x64xf32> to vector<8x32xf32>
    %237 = vector.extract_strided_slice %235 {offsets = [0, 32], sizes = [8, 32], strides = [1, 1]} : vector<8x64xf32> to vector<8x32xf32>
    %238 = vector.extract_strided_slice %229 {offsets = [0, 64], sizes = [8, 32], strides = [1, 1]} : vector<8x128xf32> to vector<8x32xf32>
    %239 = vector.extract_strided_slice %229 {offsets = [0, 96], sizes = [8, 32], strides = [1, 1]} : vector<8x128xf32> to vector<8x32xf32>
    %240 = arith.mulf %236, %239 : vector<8x32xf32>
    %241 = arith.addf %238, %240 : vector<8x32xf32>
    %242 = math.tanh %241 : vector<8x32xf32>
    %cst_50 = arith.constant 1.000000e+00 : f32
    %243 = vector.broadcast %cst_50 : f32 to vector<8x32xf32>
    %244 = arith.subf %243, %237 : vector<8x32xf32>
    %245 = arith.mulf %244, %242 : vector<8x32xf32>
    %246 = arith.mulf %237, %200 : vector<8x32xf32>
    %247 = arith.addf %245, %246 : vector<8x32xf32>
    %248 = tpu.concatenate %200, %221 in 1 : vector<8x32xf32>, vector<8x32xf32> -> vector<8x64xf32>
    %cst_51 = arith.constant dense<0.000000e+00> : vector<8x128xf32>
    %249 = tpu.matmul %248, %3, %cst_51 {dimension_numbers = #tpu.dot_dimension_numbers<[1], [0], [0], [1], [0, 0, 1, 1], [], []>} : vector<8x64xf32>, vector<64x128xf32>, vector<8x128xf32> -> vector<8x128xf32>
    %250 = arith.addf %249, %6 : vector<8x128xf32>
    %251 = vector.extract_strided_slice %250 {offsets = [0, 0], sizes = [8, 64], strides = [1, 1]} : vector<8x128xf32> to vector<8x64xf32>
    %252 = arith.negf %251 : vector<8x64xf32>
    %253 = math.exp %252 : vector<8x64xf32>
    %cst_52 = arith.constant 1.000000e+00 : f32
    %254 = vector.broadcast %cst_52 : f32 to vector<8x64xf32>
    %255 = arith.addf %254, %253 : vector<8x64xf32>
    %256 = arith.divf %254, %255 : vector<8x64xf32>
    %257 = vector.extract_strided_slice %256 {offsets = [0, 0], sizes = [8, 32], strides = [1, 1]} : vector<8x64xf32> to vector<8x32xf32>
    %258 = vector.extract_strided_slice %256 {offsets = [0, 32], sizes = [8, 32], strides = [1, 1]} : vector<8x64xf32> to vector<8x32xf32>
    %259 = vector.extract_strided_slice %250 {offsets = [0, 64], sizes = [8, 32], strides = [1, 1]} : vector<8x128xf32> to vector<8x32xf32>
    %260 = vector.extract_strided_slice %250 {offsets = [0, 96], sizes = [8, 32], strides = [1, 1]} : vector<8x128xf32> to vector<8x32xf32>
    %261 = arith.mulf %257, %260 : vector<8x32xf32>
    %262 = arith.addf %259, %261 : vector<8x32xf32>
    %263 = math.tanh %262 : vector<8x32xf32>
    %cst_53 = arith.constant 1.000000e+00 : f32
    %264 = vector.broadcast %cst_53 : f32 to vector<8x32xf32>
    %265 = arith.subf %264, %258 : vector<8x32xf32>
    %266 = arith.mulf %265, %263 : vector<8x32xf32>
    %267 = arith.mulf %258, %221 : vector<8x32xf32>
    %268 = arith.addf %266, %267 : vector<8x32xf32>
    %c4_i32 = arith.constant 4 : i32
    %269 = vector.broadcast %c4_i32 : i32 to vector<8x1xi32>
    %270 = arith.cmpi sgt, %14, %269 : vector<8x1xi32>
    %271 = vector.shape_cast %270 : vector<8x1xi1> to vector<8x1xi1>
    %272 = vector.broadcast %271 : vector<8x1xi1> to vector<8x32xi1>
    %273 = arith.select %272, %268, %226 : vector<8x32xi1>, vector<8x32xf32>
    %cst_54 = arith.constant dense<0.000000e+00> : vector<8x128xf32>
    %274 = tpu.matmul %247, %1, %cst_54 {dimension_numbers = #tpu.dot_dimension_numbers<[1], [0], [0], [1], [0, 0, 1, 1], [], []>} : vector<8x32xf32>, vector<32x128xf32>, vector<8x128xf32> -> vector<8x128xf32>
    %275 = vector.extract_strided_slice %13 {offsets = [48, 0], sizes = [8, 128], strides = [1, 1]} : vector<64x128xf32> to vector<8x128xf32>
    %276 = arith.addf %275, %274 : vector<8x128xf32>
    %277 = vector.extract_strided_slice %276 {offsets = [0, 0], sizes = [8, 64], strides = [1, 1]} : vector<8x128xf32> to vector<8x64xf32>
    %278 = arith.negf %277 : vector<8x64xf32>
    %279 = math.exp %278 : vector<8x64xf32>
    %cst_55 = arith.constant 1.000000e+00 : f32
    %280 = vector.broadcast %cst_55 : f32 to vector<8x64xf32>
    %281 = arith.addf %280, %279 : vector<8x64xf32>
    %282 = arith.divf %280, %281 : vector<8x64xf32>
    %283 = vector.extract_strided_slice %282 {offsets = [0, 0], sizes = [8, 32], strides = [1, 1]} : vector<8x64xf32> to vector<8x32xf32>
    %284 = vector.extract_strided_slice %282 {offsets = [0, 32], sizes = [8, 32], strides = [1, 1]} : vector<8x64xf32> to vector<8x32xf32>
    %285 = vector.extract_strided_slice %276 {offsets = [0, 64], sizes = [8, 32], strides = [1, 1]} : vector<8x128xf32> to vector<8x32xf32>
    %286 = vector.extract_strided_slice %276 {offsets = [0, 96], sizes = [8, 32], strides = [1, 1]} : vector<8x128xf32> to vector<8x32xf32>
    %287 = arith.mulf %283, %286 : vector<8x32xf32>
    %288 = arith.addf %285, %287 : vector<8x32xf32>
    %289 = math.tanh %288 : vector<8x32xf32>
    %cst_56 = arith.constant 1.000000e+00 : f32
    %290 = vector.broadcast %cst_56 : f32 to vector<8x32xf32>
    %291 = arith.subf %290, %284 : vector<8x32xf32>
    %292 = arith.mulf %291, %289 : vector<8x32xf32>
    %293 = arith.mulf %284, %247 : vector<8x32xf32>
    %294 = arith.addf %292, %293 : vector<8x32xf32>
    %295 = tpu.concatenate %247, %268 in 1 : vector<8x32xf32>, vector<8x32xf32> -> vector<8x64xf32>
    %cst_57 = arith.constant dense<0.000000e+00> : vector<8x128xf32>
    %296 = tpu.matmul %295, %3, %cst_57 {dimension_numbers = #tpu.dot_dimension_numbers<[1], [0], [0], [1], [0, 0, 1, 1], [], []>} : vector<8x64xf32>, vector<64x128xf32>, vector<8x128xf32> -> vector<8x128xf32>
    %297 = arith.addf %296, %6 : vector<8x128xf32>
    %298 = vector.extract_strided_slice %297 {offsets = [0, 0], sizes = [8, 64], strides = [1, 1]} : vector<8x128xf32> to vector<8x64xf32>
    %299 = arith.negf %298 : vector<8x64xf32>
    %300 = math.exp %299 : vector<8x64xf32>
    %cst_58 = arith.constant 1.000000e+00 : f32
    %301 = vector.broadcast %cst_58 : f32 to vector<8x64xf32>
    %302 = arith.addf %301, %300 : vector<8x64xf32>
    %303 = arith.divf %301, %302 : vector<8x64xf32>
    %304 = vector.extract_strided_slice %303 {offsets = [0, 0], sizes = [8, 32], strides = [1, 1]} : vector<8x64xf32> to vector<8x32xf32>
    %305 = vector.extract_strided_slice %303 {offsets = [0, 32], sizes = [8, 32], strides = [1, 1]} : vector<8x64xf32> to vector<8x32xf32>
    %306 = vector.extract_strided_slice %297 {offsets = [0, 64], sizes = [8, 32], strides = [1, 1]} : vector<8x128xf32> to vector<8x32xf32>
    %307 = vector.extract_strided_slice %297 {offsets = [0, 96], sizes = [8, 32], strides = [1, 1]} : vector<8x128xf32> to vector<8x32xf32>
    %308 = arith.mulf %304, %307 : vector<8x32xf32>
    %309 = arith.addf %306, %308 : vector<8x32xf32>
    %310 = math.tanh %309 : vector<8x32xf32>
    %cst_59 = arith.constant 1.000000e+00 : f32
    %311 = vector.broadcast %cst_59 : f32 to vector<8x32xf32>
    %312 = arith.subf %311, %305 : vector<8x32xf32>
    %313 = arith.mulf %312, %310 : vector<8x32xf32>
    %314 = arith.mulf %305, %268 : vector<8x32xf32>
    %315 = arith.addf %313, %314 : vector<8x32xf32>
    %c5_i32 = arith.constant 5 : i32
    %316 = vector.broadcast %c5_i32 : i32 to vector<8x1xi32>
    %317 = arith.cmpi sgt, %14, %316 : vector<8x1xi32>
    %318 = vector.shape_cast %317 : vector<8x1xi1> to vector<8x1xi1>
    %319 = vector.broadcast %318 : vector<8x1xi1> to vector<8x32xi1>
    %320 = arith.select %319, %315, %273 : vector<8x32xi1>, vector<8x32xf32>
    %cst_60 = arith.constant dense<0.000000e+00> : vector<8x128xf32>
    %321 = tpu.matmul %294, %1, %cst_60 {dimension_numbers = #tpu.dot_dimension_numbers<[1], [0], [0], [1], [0, 0, 1, 1], [], []>} : vector<8x32xf32>, vector<32x128xf32>, vector<8x128xf32> -> vector<8x128xf32>
    %322 = vector.extract_strided_slice %13 {offsets = [56, 0], sizes = [8, 128], strides = [1, 1]} : vector<64x128xf32> to vector<8x128xf32>
    %323 = arith.addf %322, %321 : vector<8x128xf32>
    %324 = vector.extract_strided_slice %323 {offsets = [0, 0], sizes = [8, 64], strides = [1, 1]} : vector<8x128xf32> to vector<8x64xf32>
    %325 = arith.negf %324 : vector<8x64xf32>
    %326 = math.exp %325 : vector<8x64xf32>
    %cst_61 = arith.constant 1.000000e+00 : f32
    %327 = vector.broadcast %cst_61 : f32 to vector<8x64xf32>
    %328 = arith.addf %327, %326 : vector<8x64xf32>
    %329 = arith.divf %327, %328 : vector<8x64xf32>
    %330 = vector.extract_strided_slice %329 {offsets = [0, 0], sizes = [8, 32], strides = [1, 1]} : vector<8x64xf32> to vector<8x32xf32>
    %331 = vector.extract_strided_slice %329 {offsets = [0, 32], sizes = [8, 32], strides = [1, 1]} : vector<8x64xf32> to vector<8x32xf32>
    %332 = vector.extract_strided_slice %323 {offsets = [0, 64], sizes = [8, 32], strides = [1, 1]} : vector<8x128xf32> to vector<8x32xf32>
    %333 = vector.extract_strided_slice %323 {offsets = [0, 96], sizes = [8, 32], strides = [1, 1]} : vector<8x128xf32> to vector<8x32xf32>
    %334 = arith.mulf %330, %333 : vector<8x32xf32>
    %335 = arith.addf %332, %334 : vector<8x32xf32>
    %336 = math.tanh %335 : vector<8x32xf32>
    %cst_62 = arith.constant 1.000000e+00 : f32
    %337 = vector.broadcast %cst_62 : f32 to vector<8x32xf32>
    %338 = arith.subf %337, %331 : vector<8x32xf32>
    %339 = arith.mulf %338, %336 : vector<8x32xf32>
    %340 = arith.mulf %331, %294 : vector<8x32xf32>
    %341 = arith.addf %339, %340 : vector<8x32xf32>
    %342 = tpu.concatenate %294, %315 in 1 : vector<8x32xf32>, vector<8x32xf32> -> vector<8x64xf32>
    %cst_63 = arith.constant dense<0.000000e+00> : vector<8x128xf32>
    %343 = tpu.matmul %342, %3, %cst_63 {dimension_numbers = #tpu.dot_dimension_numbers<[1], [0], [0], [1], [0, 0, 1, 1], [], []>} : vector<8x64xf32>, vector<64x128xf32>, vector<8x128xf32> -> vector<8x128xf32>
    %344 = arith.addf %343, %6 : vector<8x128xf32>
    %345 = vector.extract_strided_slice %344 {offsets = [0, 0], sizes = [8, 64], strides = [1, 1]} : vector<8x128xf32> to vector<8x64xf32>
    %346 = arith.negf %345 : vector<8x64xf32>
    %347 = math.exp %346 : vector<8x64xf32>
    %cst_64 = arith.constant 1.000000e+00 : f32
    %348 = vector.broadcast %cst_64 : f32 to vector<8x64xf32>
    %349 = arith.addf %348, %347 : vector<8x64xf32>
    %350 = arith.divf %348, %349 : vector<8x64xf32>
    %351 = vector.extract_strided_slice %350 {offsets = [0, 0], sizes = [8, 32], strides = [1, 1]} : vector<8x64xf32> to vector<8x32xf32>
    %352 = vector.extract_strided_slice %350 {offsets = [0, 32], sizes = [8, 32], strides = [1, 1]} : vector<8x64xf32> to vector<8x32xf32>
    %353 = vector.extract_strided_slice %344 {offsets = [0, 64], sizes = [8, 32], strides = [1, 1]} : vector<8x128xf32> to vector<8x32xf32>
    %354 = vector.extract_strided_slice %344 {offsets = [0, 96], sizes = [8, 32], strides = [1, 1]} : vector<8x128xf32> to vector<8x32xf32>
    %355 = arith.mulf %351, %354 : vector<8x32xf32>
    %356 = arith.addf %353, %355 : vector<8x32xf32>
    %357 = math.tanh %356 : vector<8x32xf32>
    %cst_65 = arith.constant 1.000000e+00 : f32
    %358 = vector.broadcast %cst_65 : f32 to vector<8x32xf32>
    %359 = arith.subf %358, %352 : vector<8x32xf32>
    %360 = arith.mulf %359, %357 : vector<8x32xf32>
    %361 = arith.mulf %352, %315 : vector<8x32xf32>
    %362 = arith.addf %360, %361 : vector<8x32xf32>
    %c6_i32 = arith.constant 6 : i32
    %363 = vector.broadcast %c6_i32 : i32 to vector<8x1xi32>
    %364 = arith.cmpi sgt, %14, %363 : vector<8x1xi32>
    %365 = vector.shape_cast %364 : vector<8x1xi1> to vector<8x1xi1>
    %366 = vector.broadcast %365 : vector<8x1xi1> to vector<8x32xi1>
    %367 = arith.select %366, %362, %320 : vector<8x32xi1>, vector<8x32xf32>
    %368 = tpu.concatenate %341, %362 in 1 : vector<8x32xf32>, vector<8x32xf32> -> vector<8x64xf32>
    %cst_66 = arith.constant dense<0.000000e+00> : vector<8x128xf32>
    %369 = tpu.matmul %368, %3, %cst_66 {dimension_numbers = #tpu.dot_dimension_numbers<[1], [0], [0], [1], [0, 0, 1, 1], [], []>} : vector<8x64xf32>, vector<64x128xf32>, vector<8x128xf32> -> vector<8x128xf32>
    %370 = arith.addf %369, %6 : vector<8x128xf32>
    %371 = vector.extract_strided_slice %370 {offsets = [0, 0], sizes = [8, 64], strides = [1, 1]} : vector<8x128xf32> to vector<8x64xf32>
    %372 = arith.negf %371 : vector<8x64xf32>
    %373 = math.exp %372 : vector<8x64xf32>
    %cst_67 = arith.constant 1.000000e+00 : f32
    %374 = vector.broadcast %cst_67 : f32 to vector<8x64xf32>
    %375 = arith.addf %374, %373 : vector<8x64xf32>
    %376 = arith.divf %374, %375 : vector<8x64xf32>
    %377 = vector.extract_strided_slice %376 {offsets = [0, 0], sizes = [8, 32], strides = [1, 1]} : vector<8x64xf32> to vector<8x32xf32>
    %378 = vector.extract_strided_slice %376 {offsets = [0, 32], sizes = [8, 32], strides = [1, 1]} : vector<8x64xf32> to vector<8x32xf32>
    %379 = vector.extract_strided_slice %370 {offsets = [0, 64], sizes = [8, 32], strides = [1, 1]} : vector<8x128xf32> to vector<8x32xf32>
    %380 = vector.extract_strided_slice %370 {offsets = [0, 96], sizes = [8, 32], strides = [1, 1]} : vector<8x128xf32> to vector<8x32xf32>
    %381 = arith.mulf %377, %380 : vector<8x32xf32>
    %382 = arith.addf %379, %381 : vector<8x32xf32>
    %383 = math.tanh %382 : vector<8x32xf32>
    %cst_68 = arith.constant 1.000000e+00 : f32
    %384 = vector.broadcast %cst_68 : f32 to vector<8x32xf32>
    %385 = arith.subf %384, %378 : vector<8x32xf32>
    %386 = arith.mulf %385, %383 : vector<8x32xf32>
    %387 = arith.mulf %378, %362 : vector<8x32xf32>
    %388 = arith.addf %386, %387 : vector<8x32xf32>
    %c7_i32 = arith.constant 7 : i32
    %389 = vector.broadcast %c7_i32 : i32 to vector<8x1xi32>
    %390 = arith.cmpi sgt, %14, %389 : vector<8x1xi32>
    %391 = vector.shape_cast %390 : vector<8x1xi1> to vector<8x1xi1>
    %392 = vector.broadcast %391 : vector<8x1xi1> to vector<8x32xi1>
    %393 = arith.select %392, %388, %367 : vector<8x32xi1>, vector<8x32xf32>
    %cst_69 = arith.constant dense<0.000000e+00> : vector<8x128xf32>
    %394 = tpu.matmul %393, %7, %cst_69 {dimension_numbers = #tpu.dot_dimension_numbers<[1], [0], [0], [1], [0, 0, 1, 1], [], []>} : vector<8x32xf32>, vector<32x128xf32>, vector<8x128xf32> -> vector<8x128xf32>
    %395 = vector.broadcast %8 : vector<1x128xf32> to vector<8x128xf32>
    %396 = arith.addf %394, %395 : vector<8x128xf32>
    %c0_70 = arith.constant 0 : index
    %c0_71 = arith.constant 0 : index
    %397 = vector.load %arg9[%c0_70, %c0_71] : memref<8x128xf32, #tpu.memory_space<vmem>>, vector<8x128xf32>
    tpu.vector_store %arg9[%c0_70, %c0_71], %396 {strides = array<i32>} : memref<8x128xf32, #tpu.memory_space<vmem>>, vector<8x128xf32>,
    return
  }
}

</mosaic_0001>

<bundles_post_ra>
// kernel: tpu_custom_call.1
= control target key start
LH: loop header
LB: loop body
LE: loop exit
PB: predicated region body
PF: predicated region fallthrough
CT: control target
= control target key end

     0   :  { %14 = vsyncpa [#allocation3], 0  ;;  %s3363_s0 = inlined_call_operand.hbm [shape: f32[8,8,40], index: 0, kind: input, shape index: {}]   ;;  %s3364_s1 = inlined_call_operand.vmem [shape: s32[8,1], index: 1, kind: input, shape index: {}]   ;;  %s3365_s2 = inlined_call_operand.hbm [shape: f32[40,128], index: 2, kind: input, shape index: {}]   ;;  %s3366_s3 = inlined_call_operand.hbm [shape: f32[32,128], index: 3, kind: input, shape index: {}]   ;;  %s3367_s4 = inlined_call_operand.vmem [shape: f32[1,128], index: 4, kind: input, shape index: {}]   ;;  %s3368_s5 = inlined_call_operand.hbm [shape: f32[64,128], index: 5, kind: input, shape index: {}]   ;;  %s3369_s6 = inlined_call_operand.vmem [shape: f32[1,128], index: 6, kind: input, shape index: {}]   ;;  %s3370_s7 = inlined_call_operand.vmem [shape: f32[32,128], index: 7, kind: input, shape index: {}]   ;;  %s3371_s8 = inlined_call_operand.vmem [shape: f32[1,128], index: 8, kind: input, shape index: {}]   ;;  %s3372_s9 = inlined_call_operand.hbm [shape: f32[8,128], index: 9, kind: output, shape index: {}]  }
   0x1   :  { %15 = vsyncpa [#allocation6], 0 }
   0x2   :  { %16 = vsyncpa [#allocation9], 0 }
   0x3   :  { %17 = vsyncpa [#allocation4], 0  ;;  %s2863_s30 = smov [#allocation5]   ;;  %s2864_s11 = smov [#allocation2]  }
   0x4   :  { %s37_s10 = sshll.u32 %s2863_s30, 4  ;;  %s23_s12 = sshll.u32 %s2864_s11, 4  ;;  %s38_s10 = int_to_ptr.vmem [resolvable:$true] %s37_s10  ;;  %s2927_s12 = int_to_ptr.vmem [resolvable:$true] %s23_s12 }
   0x5   :  { %s2745_s15 = scalar_lea.hbm %s3365_s2, 640 }
   0x6   :  { %p2746_p0 = scmp.ne.s32.totalorder %s3365_s2, %s2745_s15  ;;  %p2749_p1 = scmp.lt.u32.totalorder %s2745_s15, %s3365_s2 }
   0x8   :  { %p2751_p2 = pnand %p2749_p1, %p2746_p0 }
   0xa   :  { %2754 = shalt.err (!%p2751_p2)
}
   0xb   :  { %s2755_s20 = scalar_lea.vmem %s38_s10, 640  ;;  %p2760_p4 = scmp.lt.s32.totalorder %s38_s10, %s38_s10 }
   0xc   :  { %p2756_p3 = scmp.ne.s32.totalorder %s38_s10, %s2755_s20  ;;  %p2761_p5 = scmp.lt.s32.totalorder %s2755_s20, %s2755_s20 }
   0xe   :  { %p2762_p6 = por %p2761_p5, %p2760_p4 }
  0x10   :  { %p2763_p7 = pnand %p2762_p6, %p2756_p3 }
  0x12   :  { %2766 = shalt.err (!%p2763_p7)
}
  0x13   :  { %s2865_s21 = smov 128   ;;  %s2866_s22 = smov 8  }
  0x14   :  { %43 = dma.hbm_to_vmem [thread:$0]  %s3365_s2, 640, %s38_s10, [#allocation6], %s2865_s21, %s2865_s21, %s2866_s22  }
  0x15   :  { %s2767_s27 = scalar_lea.hbm %s3363_s0, 1024 }
  0x16   :  { %p2768_p8 = scmp.ne.s32.totalorder %s3363_s0, %s2767_s27  ;;  %p2771_p9 = scmp.lt.u32.totalorder %s2767_s27, %s3363_s0 }
  0x18   :  { %p2773_p10 = pnand %p2771_p9, %p2768_p8 }
  0x1a   :  { %2776 = shalt.err (!%p2773_p10)
}
  0x1b   :  { %s2777_s13 = scalar_lea.vmem %s2927_s12, 1024  ;;  %p2782_p12 = scmp.lt.s32.totalorder %s2927_s12, %s2927_s12 }
  0x1c   :  { %p2778_p11 = scmp.ne.s32.totalorder %s2927_s12, %s2777_s13  ;;  %p2783_p13 = scmp.lt.s32.totalorder %s2777_s13, %s2777_s13 }
  0x1e   :  { %p2784_p0 = por %p2783_p13, %p2782_p12 }
  0x20   :  { %p2785_p1 = pnand %p2784_p0, %p2778_p11 }
  0x22   :  { %2788 = shalt.err (!%p2785_p1)
}
  0x23   :  { %29 = dma.hbm_to_vmem [thread:$0]  %s3363_s0, 1024, %s2927_s12, [#allocation3], %s2865_s21, %s2865_s21, %s2866_s22  }
  0x24   :  { %s2867_s14 = smov [#allocation7]   ;;  %s2868_s16 = smov [#allocation8]  }
  0x25   :  { %s49_s15 = sshll.u32 %s2867_s14, 4  ;;  %s63_s17 = sshll.u32 %s2868_s16, 4  ;;  %s50_s15 = int_to_ptr.vmem [resolvable:$true] %s49_s15  ;;  %s2964_s17 = int_to_ptr.vmem [resolvable:$true] %s63_s17 }
  0x26   :  { %s2789_s20 = scalar_lea.hbm %s3366_s3, 512 }
  0x27   :  { %p2790_p2 = scmp.ne.s32.totalorder %s3366_s3, %s2789_s20  ;;  %p2793_p3 = scmp.lt.u32.totalorder %s2789_s20, %s3366_s3 }
  0x29   :  { %p2795_p4 = pnand %p2793_p3, %p2790_p2 }
  0x2b   :  { %2798 = shalt.err (!%p2795_p4)
}
  0x2c   :  { %s2799_s0 = scalar_lea.vmem %s50_s15, 512  ;;  %p2804_p6 = scmp.lt.s32.totalorder %s50_s15, %s50_s15 }
  0x2d   :  { %p2800_p5 = scmp.ne.s32.totalorder %s50_s15, %s2799_s0  ;;  %p2805_p7 = scmp.lt.s32.totalorder %s2799_s0, %s2799_s0 }
  0x2f   :  { %p2806_p8 = por %p2805_p7, %p2804_p6 }
  0x31   :  { %p2807_p9 = pnand %p2806_p8, %p2800_p5 }
  0x33   :  { %2810 = shalt.err (!%p2807_p9)
}
  0x34   :  { %55 = dma.hbm_to_vmem [thread:$0]  %s3366_s3, 512, %s50_s15, [#allocation6], %s2865_s21, %s2865_s21, %s2866_s22  }
  0x35   :  { %s2811_s30 = scalar_lea.hbm %s3368_s5, 1024 }
  0x36   :  { %p2812_p10 = scmp.ne.s32.totalorder %s3368_s5, %s2811_s30  ;;  %p2815_p11 = scmp.lt.u32.totalorder %s2811_s30, %s3368_s5 }
  0x38   :  { %p2817_p12 = pnand %p2815_p11, %p2812_p10 }
  0x3a   :  { %2820 = shalt.err (!%p2817_p12)
}
  0x3b   :  { %s2821_s14 = scalar_lea.vmem %s2964_s17, 1024  ;;  %p2826_p0 = scmp.lt.s32.totalorder %s2964_s17, %s2964_s17 }
  0x3c   :  { %p2822_p13 = scmp.ne.s32.totalorder %s2964_s17, %s2821_s14  ;;  %p2827_p1 = scmp.lt.s32.totalorder %s2821_s14, %s2821_s14 }
  0x3e   :  { %p2828_p2 = por %p2827_p1, %p2826_p0 }
  0x40   :  { %p2829_p3 = pnand %p2828_p2, %p2822_p13 }
  0x42   :  { %2832 = shalt.err (!%p2829_p3)
}
  0x43   :  { %69 = dma.hbm_to_vmem [thread:$0]  %s3368_s5, 1024, %s2964_s17, [#allocation9], %s2865_s21, %s2865_s21, %s2866_s22  }
  0x44   :  { %2855 = dma.done.wait [#allocation3], 1024  }
  0x45   :  { %2856 = vsyncadd [#allocation3], 4294966272 }
  0x46   :  { %2857 = dma.done.wait [#allocation6], 1152  }
  0x47   :  { %2858 = vsyncadd [#allocation6], 4294966144 }
  0x48   :  { %2859 = dma.done.wait [#allocation9], 1024  }
  0x49   :  { %2860 = vsyncadd [#allocation9], 4294966272  ;;  %v2869_v0 = vmov 0.0|0.0   ;;  %vm2870_vm0 = vmmov 0   ;;  %v2871_v1 = vmov 0.0   ;;  %v88_v2 = vld [vmem:[#allocation5] sm:$0xff] }
  0x4a   :  { %2483 = vmatprep.subr.bf16.mxu1 %v2869_v0  ;;  %2232 = vmatprep.mubr.msk.f32.mxu1 %vm2870_vm0, %v2871_v1  ;;  %v89_v3 = vld [vmem:[#allocation5 + $0x8] sm:$0xff]  ;;  %v90_v4 = vld [vmem:[#allocation5 + $0x10] sm:$0xff]  ;;  %vm132_vm1 = vcmask 326656   ;;  %v91_v6 = vld [vmem:[#allocation5 + $0x18] sm:$0xff]  ;;  %s2872_s22 = smov 32   ;;  %s2874_s16 = smov 96  }
  0x4b   :  { %v2475_v5 = vpack.c.bf16 %v89_v3, %v88_v2  ;;  %v93_v7 = vld [vmem:[#allocation7] sm:$0xff]  ;;  %v94_v8 = vld [vmem:[#allocation7 + $0x8] sm:$0xff]  ;;  %v2479_v9 = vpack.c.bf16 %v91_v6, %v90_v4  ;;  %v118_v11 = vld [vmem:[#allocation2] sm:$0xff]  ;;  %vm263_vm2 = vcmask 261120   ;;  %vm466_vm3 = vcmask 523264   ;;  %s2876_s28 = smov [#allocation10]  }
  0x4c   :  { %v3004_v10 = vpack.c.bf16 %v94_v8, %v93_v7  ;;  %v95_v12 = vld [vmem:[#allocation7 + $0x10] sm:$0xff]  ;;  %2212 = vmatprep.mubr.msk.f32.mxu0 %vm132_vm1, %v118_v11  ;;  %v96_v13 = vld [vmem:[#allocation7 + $0x18] sm:$0xff]  ;;  %v119_v16 = vld [vmem:[#allocation2 + $0x8] sm:$0xff]  ;;  %s2018_s29 = sshll.u32 %s2876_s28, 4  ;;  %s2019_s29 = int_to_ptr.vmem [resolvable:$true] %s2018_s29 }
  0x4d   :  { %2476 = vmatprep.subr.bf16.mxu0 %v2475_v5  ;;  %v3008_v14 = vpack.c.bf16 %v96_v13, %v95_v12  ;;  %v92_v15 = vld [vmem:[#allocation5 + $0x20] sm:$0xff]  ;;  %v98_v32 = vld [vmem:[#allocation8] sm:$0xff]  ;;  %v99_v33 = vld [vmem:[#allocation8 + $0x8] sm:$0xff]  ;;  %s2833_s30 = scalar_lea.vmem %s2019_s29, 128  ;;  %p2838_p5 = scmp.lt.s32.totalorder %s2019_s29, %s2019_s29 }
  0x4e   :  { %2478 = vmatpush3.bf16.msra.mxu0 %v2475_v5  ;;  %2485 = vmatpush3.bf16.msra.mxu1 %v3004_v10  ;;  %v3025_v18 = vld [vmem:[%s3367_s4] ss:$0 sm:$0xff]  ;;  %s2873_s4 = smov 64   ;;  %v120_v34 = vld [vmem:[#allocation2 + $0x10] sm:$0xff]  ;;  %v3032_v35 = vpack.c.bf16 %v99_v33, %v98_v32  ;;  %v121_v36 = vld [vmem:[#allocation2 + $0x18] sm:$0xff]  ;;  %p2834_p4 = scmp.ne.s32.totalorder %s2019_s29, %s2833_s30 }
  0x4f   :  { %2480 = vmatprep.subr.bf16.mxu0 %v2479_v9  ;;  %2486 = vmatprep.subr.bf16.mxu1 %v2869_v0  ;;  %v100_v37 = vld [vmem:[#allocation8 + $0x10] sm:$0xff]  ;;  %v101_v38 = vld [vmem:[#allocation8 + $0x18] sm:$0xff]  ;;  %v123_v41 = vld [vmem:[#allocation2 + $0x28] sm:$0xff]  ;;  %p2839_p6 = scmp.lt.s32.totalorder %s2833_s30, %s2833_s30 }
  0x50   :  { %v122_v39 = vld [vmem:[#allocation2 + $0x20] sm:$0xff]  ;;  %v3037_v40 = vpack.c.bf16 %v101_v38, %v100_v37  ;;  %v102_v42 = vld [vmem:[#allocation8 + $0x20] sm:$0xff]  ;;  %v103_v43 = vld [vmem:[#allocation8 + $0x28] sm:$0xff] }
  0x51   :  { %v124_v44 = vld [vmem:[#allocation2 + $0x30] sm:$0xff]  ;;  %v3043_v45 = vpack.c.bf16 %v103_v43, %v102_v42  ;;  %v125_v46 = vld [vmem:[#allocation2 + $0x38] sm:$0xff]  ;;  %v105_v49 = vld [vmem:[#allocation8 + $0x38] sm:$0xff]  ;;  %p2840_p7 = por %p2839_p6, %p2838_p5 }
  0x52   :  { %2482 = vmatpush3.bf16.msra.mxu0 %v2479_v9  ;;  %2488 = vmatpush3.bf16.msra.mxu1 %v3008_v14  ;;  %v104_v48 = vld [vmem:[#allocation8 + $0x30] sm:$0xff] }
  0x53   :  { %2210 = vmatprep.subr.mxu0 %v92_v15  ;;  %2489 = vmatprep.subr.bf16.mxu1 %v2869_v0  ;;  %v3050_v50 = vpack.c.bf16 %v105_v49, %v104_v48  ;;  %p2841_p8 = pnand %p2840_p7, %p2834_p4 }
  0x55   :  { %2233 = vmatmul.mubr.f32.vlgmr.msra.gmra.mrb[0].mxu1 %v2871_v1 }
  0x56   :  { %2211 = vmatpush3.msra.mxu0 %v92_v15  ;;  %2491 = vmatpush3.bf16.msra.mxu1 %v3004_v10 }
  0x57   :  { %2213 = vmatmul.mubr.msk.f32.vlgmr.msra.gmra.mrb[0].mxu0 %vm132_vm1, %v119_v16  ;;  %2495 = vmatprep.subr.bf16.mxu0 %v2869_v0 }
  0x58   :  { %2492 = vmatprep.subr.bf16.mxu1 %v2869_v0  ;;  %2243 = vmatprep.mubr.msk.f32.mxu1 %vm2870_vm0, %v2871_v1 }
  0x59   :  { %2215 = vmatprep.mubr.msk.f32.mxu0 %vm132_vm1, %v120_v34  ;;  %2497 = vmatpush3.bf16.msra.mxu0 %v3032_v35 }
  0x5a   :  { %2494 = vmatpush3.bf16.msra.mxu1 %v3008_v14  ;;  %2498 = vmatprep.subr.bf16.mxu0 %v2869_v0 }
  0x5b   :  { %2507 = vmatprep.subr.bf16.mxu1 %v2869_v0  ;;  %2216 = vmatmul.mubr.msk.f32.gmra.mrb[2].mxu0 %vm132_vm1, %v121_v36 }
  0x5c   :  { %2218 = vmatprep.mubr.msk.f32.mxu0 %vm132_vm1, %v122_v39 }
  0x5d   :  { %2500 = vmatpush3.bf16.msra.mxu0 %v3037_v40 }
  0x5e   :  { %2501 = vmatprep.subr.bf16.mxu0 %v2869_v0 }
  0x5f   :  { %2219 = vmatmul.mubr.msk.f32.gmra.mrb[4].mxu0 %vm132_vm1, %v123_v41 }
  0x60   :  { %2221 = vmatprep.mubr.msk.f32.mxu0 %vm132_vm1, %v124_v44 }
  0x61   :  { %2503 = vmatpush3.bf16.msra.mxu0 %v3043_v45 }
  0x62   :  { %2504 = vmatprep.subr.bf16.mxu0 %v2869_v0 }
  0x63   :  { %2222 = vmatmul.mubr.msk.f32.gmra.mrb[6].mxu0 %vm132_vm1, %v125_v46 }
  0x64   :  { %2262 = vmatprep.mubr.msk.f32.mxu0 %vm2870_vm0, %v2871_v1 }
  0x65   :  { %2506 = vmatpush3.bf16.msra.mxu0 %v3050_v50 }
  0x66   :  { %2525 = vmatprep.subr.bf16.mxu0 %v2869_v0 }
 0x128   :  { %v333_v17 = vpop.f32.mrb[0].mxu1 }
 0x129   :  { %v2234_v19 = vpop.f32.mrb[1].mxu1 }
 0x12a   :  { %v3027_v20 = vpop.f32.mrb[0].mxu0 }
 0x12b   :  { %v223_v21 = vpop.f32.mrb[1].mxu0  ;;  %v229_v2 = vadd.f32 %v3027_v20, %v3025_v18  ;;  %v3092_v20 = vld [vmem:[%s3369_s6] ss:$0 sm:$0xff] }
 0x12c   :  { %v224_v22 = vadd.f32 %v3025_v18, %v223_v21 }
 0x12e   :  { %v337_v23 = vadd.f32 %v333_v17, %v224_v22  ;;  %v3058_v56 = vpop.f32.mrb[2].mxu0 }
 0x12f   :  { %v3060_v57 = vpop.f32.mrb[3].mxu0 }
 0x130   :  { %345 = vrot.lane.b32.xlu0 %v337_v23, %s2872_s22  ;;  %v2039_v24 = vmul.f32 -1.442695, %v337_v23  ;;  %v234_v37 = vadd.f32 %v3025_v18, %v3060_v57 }
 0x132   :  { %2649 = vpow2.f32 %v2039_v24  ;;  %v3062_v58 = vpop.f32.mrb[4].mxu0 }
 0x133   :  { %v3064_v59 = vpop.f32.mrb[5].mxu0 }
 0x136   :  { %v3066_v60 = vpop.f32.mrb[6].mxu0 }
 0x137   :  { %v3068_v61 = vpop.f32.mrb[7].mxu0 }
 0x13c   :  { %v2650_v25 = vpop.eup %2649 }
 0x13d   :  { %v341_v26 = vadd.f32 1.0, %v2650_v25 }
 0x13f   :  { %2651 = vrcp.f32 %v341_v26 }
 0x149   :  { %v2652_v27 = vpop.eup %2651 }
 0x14a   :  { %v355_v51 = vsub.f32 1.0, %v2652_v27  ;;  %v361_v53 = vmul.f32 0.0, %v2652_v27 }
 0x1a2   :  { %v346_v28 = vpop.permute.xlu0 %345 }
 0x1a3   :  { %v348_v29 = vmul.f32 %v2652_v27, %v346_v28 }
 0x1a5   :  { %350 = vrot.lane.b32.xlu0 %v348_v29, %s2873_s4 }
 0x217   :  { %v351_v30 = vpop.permute.xlu0 %350 }
 0x218   :  { %v353_v31 = vadd.f32 %v351_v30, %v337_v23 }
 0x21a   :  { %2653 = vtanh.f32 %v353_v31 }
 0x224   :  { %v2654_v47 = vpop.eup %2653 }
 0x225   :  { %357 = vrot.lane.b32.xlu1 %v2654_v47, %s2874_s16 }
 0x297   :  { %v358_v52 = vpop.permute.xlu1 %357 }
 0x298   :  { %v360_v54 = vmul.f32 %v358_v52, %v355_v51 }
 0x29a   :  { %v362_v55 = vadd.f32 %v361_v53, %v360_v54 }
 0x29c   :  { %364 = vrot.lane.b32.xlu1 %v362_v55, %s2874_s16 }
 0x30e   :  { %v365_v62 = vpop.permute.xlu1 %364 }
 0x30f   :  { %v465_v63 = vsel %vm263_vm2, %v365_v62, 0.0  ;;  %2244 = vmatmul.mubr.msk.f32.vlgmr.msra.gmra.mrb[2].mxu1 %vm263_vm2, %v365_v62 }
 0x310   :  { %2263 = vmatmul.mubr.msk.f32.vlgmr.msra.gmra.mrb[8].mxu0 %vm466_vm3, %v465_v63  ;;  %2509 = vmatpush3.bf16.msra.mxu1 %v3004_v10 }
 0x311   :  { %2510 = vmatprep.subr.bf16.mxu1 %v2869_v0  ;;  %2273 = vmatprep.mubr.msk.f32.mxu1 %vm2870_vm0, %v2871_v1 }
 0x312   :  { %2527 = vmatpush3.bf16.msra.mxu0 %v3004_v10  ;;  %2303 = vmatprep.mubr.msk.f32.mxu0 %vm2870_vm0, %v2871_v1 }
 0x313   :  { %2528 = vmatprep.subr.bf16.mxu0 %v2869_v0 }
 0x314   :  { %2512 = vmatpush3.bf16.msra.mxu1 %v3008_v14 }
 0x315   :  { %2513 = vmatprep.subr.bf16.mxu1 %v2869_v0 }
 0x316   :  { %2530 = vmatpush3.bf16.msra.mxu0 %v3008_v14 }
 0x317   :  { %2531 = vmatprep.subr.bf16.mxu0 %v2869_v0 }
 0x3e2   :  { %v434_v3 = vpop.f32.mrb[2].mxu1 }
 0x3e3   :  { %v438_v4 = vadd.f32 %v434_v3, %v229_v2  ;;  %v2245_v5 = vpop.f32.mrb[3].mxu1  ;;  %v536_v6 = vpop.f32.mrb[8].mxu0 }
 0x3e4   :  { %v2264_v7 = vpop.f32.mrb[9].mxu0  ;;  %v537_v21 = vadd.f32 %v3092_v20, %v536_v6 }
 0x3e5   :  { %446 = vrot.lane.b32.xlu0 %v438_v4, %s2872_s22  ;;  %v2041_v8 = vmul.f32 -1.442695, %v438_v4 }
 0x3e6   :  { %v2043_v22 = vmul.f32 -1.442695, %v537_v21 }
 0x3e7   :  { %2655 = vpow2.f32 %v2041_v8 }
 0x3f1   :  { %v2656_v9 = vpop.eup %2655 }
 0x3f2   :  { %v442_v11 = vadd.f32 1.0, %v2656_v9 }
 0x3f4   :  { %2657 = vrcp.f32 %v442_v11 }
 0x3fe   :  { %v2658_v12 = vpop.eup %2657 }
 0x3ff   :  { %v456_v25 = vsub.f32 1.0, %v2658_v12  ;;  %v462_v27 = vmul.f32 %v2658_v12, %v362_v55 }
 0x457   :  { %v447_v13 = vpop.permute.xlu0 %446 }
 0x458   :  { %v449_v15 = vmul.f32 %v2658_v12, %v447_v13 }
 0x45a   :  { %451 = vrot.lane.b32.xlu1 %v449_v15, %s2873_s4 }
 0x4cc   :  { %v452_v16 = vpop.permute.xlu1 %451 }
 0x4cd   :  { %v454_v17 = vadd.f32 %v452_v16, %v438_v4 }
 0x4cf   :  { %2659 = vtanh.f32 %v454_v17 }
 0x4d0   :  { %2661 = vpow2.f32 %v2043_v22 }
 0x4d9   :  { %v2660_v19 = vpop.eup %2659 }
 0x4da   :  { %458 = vrot.lane.b32.xlu0 %v2660_v19, %s2874_s16  ;;  %v2662_v23 = vpop.eup %2661 }
 0x4db   :  { %v543_v24 = vadd.f32 1.0, %v2662_v23 }
 0x4dd   :  { %2663 = vrcp.f32 %v543_v24 }
 0x4de   :  { %547 = vrot.lane.b32.xlu0 %v537_v21, %s2872_s22 }
 0x4e7   :  { %v2664_v31 = vpop.eup %2663 }
 0x4e8   :  { %v557_v51 = vsub.f32 1.0, %v2664_v31  ;;  %v563_v53 = vmul.f32 0.0, %v2664_v31 }
 0x54c   :  { %v459_v26 = vpop.permute.xlu0 %458 }
 0x54d   :  { %v461_v28 = vmul.f32 %v459_v26, %v456_v25  ;;  %v239_v25 = vadd.f32 %v3058_v56, %v3025_v18 }
 0x54f   :  { %v463_v29 = vadd.f32 %v462_v27, %v461_v28 }
 0x550   :  { %v548_v30 = vpop.permute.xlu0 %547 }
 0x551   :  { %573 = vrot.lane.b32.xlu1 %v463_v29, %s2874_s16  ;;  %v550_v32 = vmul.f32 %v2664_v31, %v548_v30 }
 0x555   :  { %552 = vrot.lane.b32.xlu1 %v550_v32, %s2873_s4 }
 0x5c3   :  { %v574_v33 = vpop.permute.xlu1 %573 }
 0x5c4   :  { %2274 = vmatmul.mubr.msk.f32.vlgmr.msra.gmra.mrb[4].mxu1 %vm263_vm2, %v574_v33 }
 0x5c5   :  { %2515 = vmatpush3.bf16.msra.mxu1 %v3032_v35  ;;  %2292 = vmatprep.mubr.msk.f32.mxu1 %vm2870_vm0, %v2871_v1 }
 0x5c6   :  { %2516 = vmatprep.subr.bf16.mxu1 %v2869_v0 }
 0x5c7   :  { %v553_v34 = vpop.permute.xlu1 %552 }
 0x5c8   :  { %v555_v36 = vadd.f32 %v553_v34, %v537_v21 }
 0x5c9   :  { %2518 = vmatpush3.bf16.msra.mxu1 %v3037_v40 }
 0x5ca   :  { %2519 = vmatprep.subr.bf16.mxu1 %v2869_v0  ;;  %2665 = vtanh.f32 %v555_v36 }
 0x5cd   :  { %2521 = vmatpush3.bf16.msra.mxu1 %v3043_v45 }
 0x5ce   :  { %2522 = vmatprep.subr.bf16.mxu1 %v2869_v0 }
 0x5d1   :  { %2524 = vmatpush3.bf16.msra.mxu1 %v3050_v50 }
 0x5d2   :  { %2543 = vmatprep.subr.bf16.mxu1 %v2869_v0 }
 0x5d4   :  { %v2666_v42 = vpop.eup %2665 }
 0x697   :  { %v643_v38 = vpop.f32.mrb[4].mxu1 }
 0x698   :  { %v647_v39 = vadd.f32 %v643_v38, %v234_v37  ;;  %v2275_v41 = vpop.f32.mrb[5].mxu1 }
 0x69a   :  { %655 = vrot.lane.b32.xlu0 %v647_v39, %s2872_s22  ;;  %v2045_v43 = vmul.f32 -1.442695, %v647_v39 }
 0x69c   :  { %2667 = vpow2.f32 %v2045_v43 }
 0x69e   :  { %559 = vrot.lane.b32.xlu0 %v2666_v42, %s2874_s16 }
 0x6a6   :  { %v2668_v44 = vpop.eup %2667 }
 0x6a7   :  { %v651_v46 = vadd.f32 1.0, %v2668_v44 }
 0x6a9   :  { %2669 = vrcp.f32 %v651_v46 }
 0x6b3   :  { %v2670_v47 = vpop.eup %2669 }
 0x6b4   :  { %v665_v6 = vsub.f32 1.0, %v2670_v47  ;;  %v671_v8 = vmul.f32 %v2670_v47, %v463_v29 }
 0x70c   :  { %v656_v48 = vpop.permute.xlu0 %655 }
 0x70d   :  { %v658_v49 = vmul.f32 %v2670_v47, %v656_v48 }
 0x70f   :  { %660 = vrot.lane.b32.xlu1 %v658_v49, %s2873_s4 }
 0x710   :  { %v560_v52 = vpop.permute.xlu0 %559 }
 0x711   :  { %v562_v54 = vmul.f32 %v560_v52, %v557_v51 }
 0x713   :  { %v3115_v55 = vadd.f32 %v563_v53, %v562_v54 }
 0x715   :  { %v674_v57 = vsel %vm263_vm2, %v574_v33, %v3115_v55 }
 0x716   :  { %2293 = vmatmul.mubr.msk.f32.vlgmr.msra.gmra.mrb[6].mxu1 %vm466_vm3, %v674_v57 }
 0x717   :  { %2545 = vmatpush3.bf16.msra.mxu1 %v3004_v10  ;;  %2333 = vmatprep.mubr.msk.f32.mxu1 %vm2870_vm0, %v2871_v1 }
 0x718   :  { %2546 = vmatprep.subr.bf16.mxu1 %v2869_v0 }
 0x71b   :  { %2548 = vmatpush3.bf16.msra.mxu1 %v3008_v14 }
 0x71c   :  { %2549 = vmatprep.subr.bf16.mxu1 %v2869_v0 }
 0x781   :  { %v661_v62 = vpop.permute.xlu1 %660 }
 0x782   :  { %v663_v63 = vadd.f32 %v661_v62, %v647_v39 }
 0x784   :  { %2671 = vtanh.f32 %v663_v63 }
 0x78e   :  { %v2672_v2 = vpop.eup %2671 }
 0x78f   :  { %667 = vrot.lane.b32.xlu1 %v2672_v2, %s2874_s16 }
 0x7e9   :  { %v744_v3 = vpop.f32.mrb[6].mxu1 }
 0x7ea   :  { %v745_v4 = vadd.f32 %v3092_v20, %v744_v3  ;;  %v2294_v5 = vpop.f32.mrb[7].mxu1 }
 0x7ec   :  { %755 = vrot.lane.b32.xlu1 %v745_v4, %s2872_s22  ;;  %v2047_v12 = vmul.f32 -1.442695, %v745_v4 }
 0x7ee   :  { %2673 = vpow2.f32 %v2047_v12 }
 0x7f8   :  { %v2674_v13 = vpop.eup %2673 }
 0x7f9   :  { %v751_v15 = vadd.f32 1.0, %v2674_v13 }
 0x7fb   :  { %2675 = vrcp.f32 %v751_v15 }
 0x801   :  { %v668_v7 = vpop.permute.xlu1 %667 }
 0x802   :  { %v670_v9 = vmul.f32 %v668_v7, %v665_v6 }
 0x804   :  { %v3129_v11 = vadd.f32 %v671_v8, %v670_v9 }
 0x805   :  { %v2676_v16 = vpop.eup %2675 }
 0x806   :  { %781 = vrot.lane.b32.xlu0 %v3129_v11, %s2874_s16  ;;  %v765_v29 = vsub.f32 1.0, %v2676_v16  ;;  %v771_v31 = vmul.f32 %v2676_v16, %v3115_v55 }
 0x85e   :  { %v756_v17 = vpop.permute.xlu1 %755 }
 0x85f   :  { %v758_v19 = vmul.f32 %v2676_v16, %v756_v17  ;;  %v244_v17 = vadd.f32 %v3025_v18, %v3064_v59 }
 0x861   :  { %760 = vrot.lane.b32.xlu0 %v758_v19, %s2873_s4 }
 0x878   :  { %v782_v21 = vpop.permute.xlu0 %781 }
 0x879   :  { %2304 = vmatmul.mubr.msk.f32.vlgmr.msra.gmra.mrb[10].mxu0 %vm263_vm2, %v782_v21 }
 0x87a   :  { %2533 = vmatpush3.bf16.msra.mxu0 %v3032_v35  ;;  %2322 = vmatprep.mubr.msk.f32.mxu0 %vm2870_vm0, %v2871_v1 }
 0x87b   :  { %2534 = vmatprep.subr.bf16.mxu0 %v2869_v0 }
 0x87e   :  { %2536 = vmatpush3.bf16.msra.mxu0 %v3037_v40 }
 0x87f   :  { %2537 = vmatprep.subr.bf16.mxu0 %v2869_v0 }
 0x882   :  { %2539 = vmatpush3.bf16.msra.mxu0 %v3043_v45 }
 0x883   :  { %2540 = vmatprep.subr.bf16.mxu0 %v2869_v0 }
 0x886   :  { %2542 = vmatpush3.bf16.msra.mxu0 %v3050_v50 }
 0x887   :  { %2561 = vmatprep.subr.bf16.mxu0 %v2869_v0 }
 0x8d3   :  { %v761_v22 = vpop.permute.xlu0 %760 }
 0x8d4   :  { %v763_v23 = vadd.f32 %v761_v22, %v745_v4 }
 0x8d6   :  { %2677 = vtanh.f32 %v763_v23 }
 0x8e0   :  { %v2678_v24 = vpop.eup %2677 }
 0x8e1   :  { %767 = vrot.lane.b32.xlu0 %v2678_v24, %s2874_s16 }
 0x94c   :  { %v851_v26 = vpop.f32.mrb[10].mxu0 }
 0x94d   :  { %v855_v27 = vadd.f32 %v851_v26, %v239_v25  ;;  %v2305_v28 = vpop.f32.mrb[11].mxu0 }
 0x94f   :  { %863 = vrot.lane.b32.xlu1 %v855_v27, %s2872_s22  ;;  %v2049_v56 = vmul.f32 -1.442695, %v855_v27 }
 0x951   :  { %2679 = vpow2.f32 %v2049_v56 }
 0x953   :  { %v768_v30 = vpop.permute.xlu0 %767 }
 0x954   :  { %v770_v32 = vmul.f32 %v768_v30, %v765_v29 }
 0x956   :  { %v3150_v33 = vadd.f32 %v771_v31, %v770_v32 }
 0x958   :  { %v882_v34 = vsel %vm263_vm2, %v782_v21, %v3150_v33 }
 0x959   :  { %2323 = vmatmul.mubr.msk.f32.vlgmr.msra.gmra.mrb[12].mxu0 %vm466_vm3, %v882_v34 }
 0x95a   :  { %2563 = vmatpush3.bf16.msra.mxu0 %v3004_v10  ;;  %2363 = vmatprep.mubr.msk.f32.mxu0 %vm2870_vm0, %v2871_v1 }
 0x95b   :  { %2564 = vmatprep.subr.bf16.mxu0 %v2869_v0  ;;  %v2680_v36 = vpop.eup %2679 }
 0x95c   :  { %v859_v37 = vadd.f32 1.0, %v2680_v36 }
 0x95e   :  { %2566 = vmatpush3.bf16.msra.mxu0 %v3008_v14  ;;  %2681 = vrcp.f32 %v859_v37 }
 0x95f   :  { %2567 = vmatprep.subr.bf16.mxu0 %v2869_v0 }
 0x968   :  { %v2682_v38 = vpop.eup %2681 }
 0x969   :  { %v873_v53 = vsub.f32 1.0, %v2682_v38  ;;  %v879_v57 = vmul.f32 %v2682_v38, %v3129_v11 }
 0x9c1   :  { %v864_v39 = vpop.permute.xlu1 %863 }
 0x9c2   :  { %v866_v41 = vmul.f32 %v2682_v38, %v864_v39 }
 0x9c4   :  { %868 = vrot.lane.b32.xlu1 %v866_v41, %s2873_s4 }
 0xa2c   :  { %v952_v42 = vpop.f32.mrb[12].mxu0 }
 0xa2d   :  { %v2324_v43 = vpop.f32.mrb[13].mxu0  ;;  %v953_v48 = vadd.f32 %v3092_v20, %v952_v42 }
 0xa2f   :  { %v2051_v49 = vmul.f32 -1.442695, %v953_v48 }
 0xa36   :  { %v869_v44 = vpop.permute.xlu1 %868 }
 0xa37   :  { %v871_v46 = vadd.f32 %v869_v44, %v855_v27 }
 0xa39   :  { %2683 = vtanh.f32 %v871_v46 }
 0xa3a   :  { %2685 = vpow2.f32 %v2051_v49 }
 0xa43   :  { %v2684_v47 = vpop.eup %2683 }
 0xa44   :  { %875 = vrot.lane.b32.xlu0 %v2684_v47, %s2874_s16  ;;  %v2686_v51 = vpop.eup %2685 }
 0xa45   :  { %v959_v52 = vadd.f32 1.0, %v2686_v51 }
 0xa47   :  { %2687 = vrcp.f32 %v959_v52 }
 0xa48   :  { %963 = vrot.lane.b32.xlu0 %v953_v48, %s2872_s22 }
 0xa51   :  { %v2688_v3 = vpop.eup %2687 }
 0xa52   :  { %v973_v9 = vsub.f32 1.0, %v2688_v3  ;;  %v979_v12 = vmul.f32 %v2688_v3, %v3150_v33 }
 0xab6   :  { %v876_v54 = vpop.permute.xlu0 %875 }
 0xab7   :  { %v878_v62 = vmul.f32 %v876_v54, %v873_v53 }
 0xab9   :  { %v3166_v63 = vadd.f32 %v879_v57, %v878_v62 }
 0xaba   :  { %v964_v2 = vpop.permute.xlu0 %963 }
 0xabb   :  { %989 = vrot.lane.b32.xlu1 %v3166_v63, %s2874_s16  ;;  %v966_v4 = vmul.f32 %v2688_v3, %v964_v2  ;;  %v249_v3 = vadd.f32 %v3062_v58, %v3025_v18 }
 0xabf   :  { %968 = vrot.lane.b32.xlu1 %v966_v4, %s2873_s4 }
 0xb2d   :  { %v990_v5 = vpop.permute.xlu1 %989 }
 0xb2e   :  { %2334 = vmatmul.mubr.msk.f32.vlgmr.msra.gmra.mrb[8].mxu1 %vm263_vm2, %v990_v5 }
 0xb2f   :  { %2551 = vmatpush3.bf16.msra.mxu1 %v3032_v35  ;;  %2352 = vmatprep.mubr.msk.f32.mxu1 %vm2870_vm0, %v2871_v1 }
 0xb30   :  { %2552 = vmatprep.subr.bf16.mxu1 %v2869_v0 }
 0xb31   :  { %v969_v6 = vpop.permute.xlu1 %968 }
 0xb32   :  { %v971_v7 = vadd.f32 %v969_v6, %v953_v48 }
 0xb33   :  { %2554 = vmatpush3.bf16.msra.mxu1 %v3037_v40 }
 0xb34   :  { %2689 = vtanh.f32 %v971_v7  ;;  %2555 = vmatprep.subr.bf16.mxu1 %v2869_v0 }
 0xb37   :  { %2557 = vmatpush3.bf16.msra.mxu1 %v3043_v45 }
 0xb38   :  { %2558 = vmatprep.subr.bf16.mxu1 %v2869_v0 }
 0xb3b   :  { %2560 = vmatpush3.bf16.msra.mxu1 %v3050_v50 }
 0xb3c   :  { %2579 = vmatprep.subr.bf16.mxu1 %v2869_v0 }
 0xb3e   :  { %v2690_v8 = vpop.eup %2689 }
 0xb3f   :  { %975 = vrot.lane.b32.xlu0 %v2690_v8, %s2874_s16 }
 0xbb1   :  { %v976_v11 = vpop.permute.xlu0 %975 }
 0xbb2   :  { %v978_v13 = vmul.f32 %v976_v11, %v973_v9 }
 0xbb4   :  { %v3184_v15 = vadd.f32 %v979_v12, %v978_v13 }
 0xbb6   :  { %v1090_v16 = vsel %vm263_vm2, %v990_v5, %v3184_v15 }
 0xbb7   :  { %2353 = vmatmul.mubr.msk.f32.vlgmr.msra.gmra.mrb[10].mxu1 %vm466_vm3, %v1090_v16 }
 0xbb8   :  { %2581 = vmatpush3.bf16.msra.mxu1 %v3004_v10  ;;  %2393 = vmatprep.mubr.msk.f32.mxu1 %vm2870_vm0, %v2871_v1 }
 0xbb9   :  { %2582 = vmatprep.subr.bf16.mxu1 %v2869_v0 }
 0xbbc   :  { %2584 = vmatpush3.bf16.msra.mxu1 %v3008_v14 }
 0xbbd   :  { %2585 = vmatprep.subr.bf16.mxu1 %v2869_v0 }
 0xc01   :  { %v1059_v19 = vpop.f32.mrb[8].mxu1 }
 0xc02   :  { %v1063_v21 = vadd.f32 %v1059_v19, %v244_v17  ;;  %v2335_v22 = vpop.f32.mrb[9].mxu1 }
 0xc04   :  { %1071 = vrot.lane.b32.xlu1 %v1063_v21, %s2872_s22  ;;  %v2053_v23 = vmul.f32 -1.442695, %v1063_v21 }
 0xc06   :  { %2691 = vpow2.f32 %v2053_v23 }
 0xc10   :  { %v2692_v24 = vpop.eup %2691 }
 0xc11   :  { %v1067_v25 = vadd.f32 1.0, %v2692_v24 }
 0xc13   :  { %2693 = vrcp.f32 %v1067_v25 }
 0xc1d   :  { %v2694_v26 = vpop.eup %2693 }
 0xc1e   :  { %v1081_v38 = vsub.f32 1.0, %v2694_v26  ;;  %v1087_v41 = vmul.f32 %v2694_v26, %v3166_v63 }
 0xc76   :  { %v1072_v27 = vpop.permute.xlu1 %1071 }
 0xc77   :  { %v1074_v28 = vmul.f32 %v2694_v26, %v1072_v27 }
 0xc79   :  { %1076 = vrot.lane.b32.xlu0 %v1074_v28, %s2873_s4 }
 0xc8a   :  { %v1160_v29 = vpop.f32.mrb[10].mxu1 }
 0xc8b   :  { %v2354_v30 = vpop.f32.mrb[11].mxu1  ;;  %v1161_v34 = vadd.f32 %v3092_v20, %v1160_v29 }
 0xc8d   :  { %v2055_v56 = vmul.f32 -1.442695, %v1161_v34 }
 0xceb   :  { %v1077_v31 = vpop.permute.xlu0 %1076 }
 0xcec   :  { %v1079_v32 = vadd.f32 %v1077_v31, %v1063_v21 }
 0xcee   :  { %2695 = vtanh.f32 %v1079_v32 }
 0xcef   :  { %2697 = vpow2.f32 %v2055_v56 }
 0xcf8   :  { %v2696_v59 = vpop.eup %2695 }
 0xcf9   :  { %1083 = vrot.lane.b32.xlu1 %v2696_v59, %s2874_s16  ;;  %v2698_v36 = vpop.eup %2697 }
 0xcfa   :  { %v1167_v37 = vadd.f32 1.0, %v2698_v36 }
 0xcfc   :  { %2699 = vrcp.f32 %v1167_v37 }
 0xcfd   :  { %1171 = vrot.lane.b32.xlu1 %v1161_v34, %s2872_s22 }
 0xd06   :  { %v2700_v46 = vpop.eup %2699 }
 0xd07   :  { %v1181_v53 = vsub.f32 1.0, %v2700_v46  ;;  %v1187_v57 = vmul.f32 %v2700_v46, %v3184_v15 }
 0xd6b   :  { %v1084_v39 = vpop.permute.xlu1 %1083 }
 0xd6c   :  { %v1086_v42 = vmul.f32 %v1084_v39, %v1081_v38 }
 0xd6e   :  { %v3203_v43 = vadd.f32 %v1087_v41, %v1086_v42 }
 0xd6f   :  { %v1172_v44 = vpop.permute.xlu1 %1171 }
 0xd70   :  { %1197 = vrot.lane.b32.xlu0 %v3203_v43, %s2874_s16  ;;  %v1174_v47 = vmul.f32 %v2700_v46, %v1172_v44 }
 0xd74   :  { %1176 = vrot.lane.b32.xlu0 %v1174_v47, %s2873_s4 }
 0xde2   :  { %v1198_v48 = vpop.permute.xlu0 %1197 }
 0xde3   :  { %2364 = vmatmul.mubr.msk.f32.vlgmr.msra.gmra.mrb[14].mxu0 %vm263_vm2, %v1198_v48 }
 0xde4   :  { %2569 = vmatpush3.bf16.msra.mxu0 %v3032_v35  ;;  %2382 = vmatprep.mubr.msk.f32.mxu0 %vm2870_vm0, %v2871_v1 }
 0xde5   :  { %2570 = vmatprep.subr.bf16.mxu0 %v2869_v0 }
 0xde6   :  { %v1177_v49 = vpop.permute.xlu0 %1176 }
 0xde7   :  { %v1179_v51 = vadd.f32 %v1177_v49, %v1161_v34 }
 0xde8   :  { %2572 = vmatpush3.bf16.msra.mxu0 %v3037_v40 }
 0xde9   :  { %2701 = vtanh.f32 %v1179_v51  ;;  %2573 = vmatprep.subr.bf16.mxu0 %v2869_v0 }
 0xdec   :  { %2575 = vmatpush3.bf16.msra.mxu0 %v3043_v45 }
 0xded   :  { %2576 = vmatprep.subr.bf16.mxu0 %v2869_v0 }
 0xdf0   :  { %2578 = vmatpush3.bf16.msra.mxu0 %v3050_v50 }
 0xdf1   :  { %2597 = vmatprep.subr.bf16.mxu0 %v2869_v0 }
 0xdf3   :  { %v2702_v52 = vpop.eup %2701 }
 0xdf4   :  { %1183 = vrot.lane.b32.xlu1 %v2702_v52, %s2874_s16 }
 0xe66   :  { %v1184_v54 = vpop.permute.xlu1 %1183 }
 0xe67   :  { %v1186_v62 = vmul.f32 %v1184_v54, %v1181_v53 }
 0xe69   :  { %v3221_v63 = vadd.f32 %v1187_v57, %v1186_v62 }
 0xe6b   :  { %v1298_v2 = vsel %vm263_vm2, %v1198_v48, %v3221_v63 }
 0xe6c   :  { %2383 = vmatmul.mubr.msk.f32.vlgmr.msra.gmra.mrb[16].mxu0 %vm466_vm3, %v1298_v2 }
 0xe6d   :  { %2599 = vmatpush3.bf16.msra.mxu0 %v3004_v10  ;;  %2423 = vmatprep.mubr.msk.f32.mxu0 %vm2870_vm0, %v2871_v1 }
 0xe6e   :  { %2600 = vmatprep.subr.bf16.mxu0 %v2869_v0 }
 0xe71   :  { %2602 = vmatpush3.bf16.msra.mxu0 %v3008_v14 }
 0xe72   :  { %2603 = vmatprep.subr.bf16.mxu0 %v2869_v0 }
 0xeb6   :  { %v1267_v4 = vpop.f32.mrb[14].mxu0 }
 0xeb7   :  { %v1271_v5 = vadd.f32 %v1267_v4, %v249_v3  ;;  %v2365_v6 = vpop.f32.mrb[15].mxu0 }
 0xeb9   :  { %1279 = vrot.lane.b32.xlu0 %v1271_v5, %s2872_s22  ;;  %v2057_v7 = vmul.f32 -1.442695, %v1271_v5 }
 0xebb   :  { %2703 = vpow2.f32 %v2057_v7 }
 0xec5   :  { %v2704_v10 = vpop.eup %2703 }
 0xec6   :  { %v1275_v8 = vadd.f32 1.0, %v2704_v10 }
 0xec8   :  { %2705 = vrcp.f32 %v1275_v8 }
 0xed2   :  { %v2706_v9 = vpop.eup %2705 }
 0xed3   :  { %v1289_v27 = vsub.f32 1.0, %v2706_v9  ;;  %v1295_v29 = vmul.f32 %v2706_v9, %v3203_v43  ;;  %v254_v43 = vadd.f32 %v3025_v18, %v3068_v61 }
 0xf2b   :  { %v1280_v11 = vpop.permute.xlu0 %1279 }
 0xf2c   :  { %v1282_v12 = vmul.f32 %v2706_v9, %v1280_v11 }
 0xf2e   :  { %1284 = vrot.lane.b32.xlu1 %v1282_v12, %s2873_s4 }
 0xf3f   :  { %v1368_v14 = vpop.f32.mrb[16].mxu0 }
 0xf40   :  { %v1369_v13 = vadd.f32 %v3092_v20, %v1368_v14  ;;  %v2384_v16 = vpop.f32.mrb[17].mxu0 }
 0xf42   :  { %1379 = vrot.lane.b32.xlu1 %v1369_v13, %s2872_s22  ;;  %v2059_v58 = vmul.f32 -1.442695, %v1369_v13 }
 0xf44   :  { %2707 = vpow2.f32 %v2059_v58 }
 0xf4e   :  { %v2708_v21 = vpop.eup %2707 }
 0xf4f   :  { %v1375_v22 = vadd.f32 1.0, %v2708_v21 }
 0xfa0   :  { %v1285_v17 = vpop.permute.xlu1 %1284 }
 0xfa1   :  { %v1287_v19 = vadd.f32 %v1285_v17, %v1271_v5 }
 0xfa3   :  { %2709 = vtanh.f32 %v1287_v19 }
 0xfa4   :  { %2711 = vrcp.f32 %v1375_v22 }
 0xfad   :  { %v2710_v23 = vpop.eup %2709 }
 0xfae   :  { %1291 = vrot.lane.b32.xlu0 %v2710_v23, %s2874_s16  ;;  %v2712_v24 = vpop.eup %2711 }
 0xfaf   :  { %v1389_v36 = vsub.f32 1.0, %v2712_v24  ;;  %v1395_v38 = vmul.f32 %v2712_v24, %v3221_v63 }
 0xfb4   :  { %v1380_v25 = vpop.permute.xlu1 %1379 }
 0xfb5   :  { %v1382_v26 = vmul.f32 %v2712_v24, %v1380_v25 }
 0xfb7   :  { %1384 = vrot.lane.b32.xlu1 %v1382_v26, %s2873_s4 }
0x1020   :  { %v1292_v28 = vpop.permute.xlu0 %1291 }
0x1021   :  { %v1294_v30 = vmul.f32 %v1292_v28, %v1289_v27 }
0x1023   :  { %v3241_v31 = vadd.f32 %v1295_v29, %v1294_v30 }
0x1025   :  { %1405 = vrot.lane.b32.xlu0 %v3241_v31, %s2874_s16 }
0x1029   :  { %v1385_v32 = vpop.permute.xlu1 %1384 }
0x102a   :  { %v1387_v59 = vadd.f32 %v1385_v32, %v1369_v13 }
0x102c   :  { %2713 = vtanh.f32 %v1387_v59 }
0x1036   :  { %v2714_v34 = vpop.eup %2713 }
0x1037   :  { %1391 = vrot.lane.b32.xlu0 %v2714_v34, %s2874_s16 }
0x1097   :  { %v1406_v56 = vpop.permute.xlu0 %1405 }
0x1098   :  { %2394 = vmatmul.mubr.msk.f32.vlgmr.msra.gmra.mrb[12].mxu1 %vm263_vm2, %v1406_v56 }
0x1099   :  { %2587 = vmatpush3.bf16.msra.mxu1 %v3032_v35  ;;  %2412 = vmatprep.mubr.msk.f32.mxu1 %vm2870_vm0, %v2871_v1 }
0x109a   :  { %2588 = vmatprep.subr.bf16.mxu1 %v2869_v0 }
0x109d   :  { %2590 = vmatpush3.bf16.msra.mxu1 %v3037_v40 }
0x109e   :  { %2591 = vmatprep.subr.bf16.mxu1 %v2869_v0 }
0x10a1   :  { %2593 = vmatpush3.bf16.msra.mxu1 %v3043_v45 }
0x10a2   :  { %2594 = vmatprep.subr.bf16.mxu1 %v2869_v0 }
0x10a5   :  { %2596 = vmatpush3.bf16.msra.mxu1 %v3050_v50 }
0x10a6   :  { %2615 = vmatprep.subr.bf16.mxu1 %v2869_v0 }
0x10a9   :  { %v1392_v37 = vpop.permute.xlu0 %1391 }
0x10aa   :  { %v1394_v39 = vmul.f32 %v1392_v37, %v1389_v36 }
0x10ac   :  { %v3258_v41 = vadd.f32 %v1395_v38, %v1394_v39 }
0x10ae   :  { %v1506_v42 = vsel %vm263_vm2, %v1406_v56, %v3258_v41 }
0x10af   :  { %2413 = vmatmul.mubr.msk.f32.vlgmr.msra.gmra.mrb[14].mxu1 %vm466_vm3, %v1506_v42 }
0x10b0   :  { %2617 = vmatpush3.bf16.msra.mxu1 %v3032_v35  ;;  %2461 = vmatprep.mubr.msk.f32.mxu1 %vm2870_vm0, %v2871_v1 }
0x10b1   :  { %2618 = vmatprep.subr.bf16.mxu1 %v2869_v0 }
0x10b4   :  { %2620 = vmatpush3.bf16.msra.mxu1 %v3037_v40 }
0x10b5   :  { %2621 = vmatprep.subr.bf16.mxu1 %v2869_v0 }
0x10b8   :  { %2623 = vmatpush3.bf16.msra.mxu1 %v3043_v45 }
0x10b9   :  { %2624 = vmatprep.subr.bf16.mxu1 %v2869_v0 }
0x10bc   :  { %2626 = vmatpush3.bf16.msra.mxu1 %v3050_v50 }
0x116b   :  { %v1475_v44 = vpop.f32.mrb[12].mxu1 }
0x116c   :  { %v1479_v46 = vadd.f32 %v1475_v44, %v254_v43  ;;  %v2395_v47 = vpop.f32.mrb[13].mxu1 }
0x116e   :  { %1487 = vrot.lane.b32.xlu1 %v1479_v46, %s2872_s22  ;;  %v2061_v52 = vmul.f32 -1.442695, %v1479_v46 }
0x1170   :  { %2715 = vpow2.f32 %v2061_v52 }
0x117a   :  { %v2716_v53 = vpop.eup %2715 }
0x117b   :  { %v1483_v54 = vadd.f32 1.0, %v2716_v53 }
0x117d   :  { %2717 = vrcp.f32 %v1483_v54 }
0x1182   :  { %v1576_v48 = vpop.f32.mrb[14].mxu1 }
0x1183   :  { %v1577_v49 = vadd.f32 %v3092_v20, %v1576_v48  ;;  %v2414_v51 = vpop.f32.mrb[15].mxu1 }
0x1185   :  { %1587 = vrot.lane.b32.xlu1 %v1577_v49, %s2872_s22  ;;  %v2063_v57 = vmul.f32 -1.442695, %v1577_v49 }
0x1187   :  { %2719 = vpow2.f32 %v2063_v57  ;;  %v2718_v62 = vpop.eup %2717 }
0x1188   :  { %v1497_v13 = vsub.f32 1.0, %v2718_v62  ;;  %v1503_v58 = vmul.f32 %v2718_v62, %v3241_v31 }
0x1191   :  { %v2720_v3 = vpop.eup %2719 }
0x1192   :  { %v1583_v4 = vadd.f32 1.0, %v2720_v3 }
0x1194   :  { %2721 = vrcp.f32 %v1583_v4 }
0x119e   :  { %v2722_v5 = vpop.eup %2721 }
0x119f   :  { %v1597_v23 = vsub.f32 1.0, %v2722_v5  ;;  %v1603_v25 = vmul.f32 %v2722_v5, %v3258_v41 }
0x11e0   :  { %v1488_v61 = vpop.permute.xlu1 %1487 }
0x11e1   :  { %v1490_v2 = vmul.f32 %v2718_v62, %v1488_v61 }
0x11e3   :  { %1492 = vrot.lane.b32.xlu0 %v1490_v2, %s2873_s4 }
0x11f7   :  { %v1588_v6 = vpop.permute.xlu1 %1587 }
0x11f8   :  { %v1590_v7 = vmul.f32 %v2722_v5, %v1588_v6  ;;  %v2875_v6 = vmov 0  }
0x11f9   :  { %2647 = vset.pattern.permute.xlu1 %v2875_v6  ;;  %2648 = vset.pattern.permute.xlu0 %v2875_v6 }
0x11fa   :  { %1592 = vrot.lane.b32.xlu1 %v1590_v7, %s2873_s4  ;;  %v262_v7 = vld [vmem:[%s3364_s1] sm:$0xff] }
0x11fb   :  { %vm565_vm4 = vcmp.gt.s32.totalorder %v262_v7, 0  ;;  %vm981_vm5 = vcmp.gt.s32.totalorder %v262_v7, 2  ;;  %vm1189_vm6 = vcmp.gt.s32.totalorder %v262_v7, 3  ;;  %vm1605_vm7 = vcmp.gt.s32.totalorder %v262_v7, 5 }
0x11fc   :  { %vm1923_vm8 = vcmp.gt.s32.totalorder %v262_v7, 7  ;;  %vm773_vm9 = vcmp.gt.s32.totalorder %v262_v7, 1  ;;  %vm1397_vm10 = vcmp.gt.s32.totalorder %v262_v7, 4  ;;  %vm1813_vm11 = vcmp.gt.s32.totalorder %v262_v7, 6 }
0x1255   :  { %v1493_v10 = vpop.permute.xlu0 %1492 }
0x1256   :  { %v1495_v8 = vadd.f32 %v1493_v10, %v1479_v46 }
0x1258   :  { %2723 = vtanh.f32 %v1495_v8 }
0x1262   :  { %v2724_v9 = vpop.eup %2723 }
0x1263   :  { %1499 = vrot.lane.b32.xlu0 %v2724_v9, %s2874_s16 }
0x126c   :  { %v1593_v11 = vpop.permute.xlu1 %1592 }
0x126d   :  { %v1595_v12 = vadd.f32 %v1593_v11, %v1577_v49  ;;  %v566_v11 = vsel %vm565_vm4, 1, %v2875_v6 }
0x126f   :  { %2725 = vtanh.f32 %v1595_v12  ;;  %v982_v12 = vsel %vm981_vm5, 1, %v2875_v6 }
0x1279   :  { %v2726_v14 = vpop.eup %2725 }
0x127a   :  { %1599 = vrot.lane.b32.xlu1 %v2726_v14, %s2874_s16  ;;  %v1190_v14 = vsel %vm1189_vm6, 1, %v2875_v6 }
0x12d5   :  { %v1500_v16 = vpop.permute.xlu0 %1499 }
0x12d6   :  { %v1502_v17 = vmul.f32 %v1500_v16, %v1497_v13  ;;  %v1606_v13 = vsel %vm1605_vm7, 1, %v2875_v6  ;;  %v1924_v16 = vsel %vm1923_vm8, 1, %v2875_v6 }
0x12d8   :  { %v1504_v19 = vadd.f32 %v1503_v58, %v1502_v17 }
0x12da   :  { %1613 = vrot.lane.b32.xlu0 %v1504_v19, %s2874_s16 }
0x12ec   :  { %v1600_v22 = vpop.permute.xlu1 %1599 }
0x12ed   :  { %v1602_v24 = vmul.f32 %v1600_v22, %v1597_v23  ;;  %v774_v23 = vsel %vm773_vm9, 1, %v2875_v6 }
0x12ef   :  { %v3293_v26 = vadd.f32 %v1603_v25, %v1602_v24  ;;  %v1398_v24 = vsel %vm1397_vm10, 1, %v2875_v6  ;;  %v1814_v25 = vsel %vm1813_vm11, 1, %v2875_v6 }
0x134c   :  { %v1614_v21 = vpop.permute.xlu0 %1613 }
0x134d   :  { %2424 = vmatmul.mubr.msk.f32.vlgmr.msra.gmra.mrb[18].mxu0 %vm263_vm2, %v1614_v21 }
0x134e   :  { %2605 = vmatpush3.bf16.msra.mxu0 %v3032_v35  ;;  %2442 = vmatprep.mubr.msk.f32.mxu0 %vm2870_vm0, %v2871_v1  ;;  %v1714_v35 = vsel %vm263_vm2, %v1614_v21, %v3293_v26 }
0x134f   :  { %2606 = vmatprep.subr.bf16.mxu0 %v2869_v0 }
0x1352   :  { %2608 = vmatpush3.bf16.msra.mxu0 %v3037_v40  ;;  %v259_v40 = vadd.f32 %v3066_v60, %v3025_v18 }
0x1353   :  { %2609 = vmatprep.subr.bf16.mxu0 %v2869_v0 }
0x1356   :  { %2611 = vmatpush3.bf16.msra.mxu0 %v3043_v45 }
0x1357   :  { %2612 = vmatprep.subr.bf16.mxu0 %v2869_v0 }
0x135a   :  { %2614 = vmatpush3.bf16.msra.mxu0 %v3050_v50 }
0x135b   :  { %2627 = vmatprep.subr.bf16.mxu0 %v2869_v0 }
0x135d   :  { %2443 = vmatmul.mubr.msk.f32.vlgmr.msra.gmra.mrb[20].mxu0 %vm466_vm3, %v1714_v35 }
0x135e   :  { %2472 = vmatprep.mubr.msk.f32.mxu0 %vm2870_vm0, %v2871_v1 }
0x1420   :  { %v1683_v45 = vpop.f32.mrb[18].mxu0 }
0x1421   :  { %v1687_v27 = vadd.f32 %v1683_v45, %v259_v40  ;;  %v2425_v28 = vpop.f32.mrb[19].mxu0  ;;  %v113_v45 = vld [vmem:[%s3370_s7] sm:$0xff] }
0x1422   :  { %v115_v28 = vld [vmem:[%s3370_s7 + $0x10] sm:$0xff] }
0x1423   :  { %1695 = vrot.lane.b32.xlu0 %v1687_v27, %s2872_s22  ;;  %v2065_v31 = vmul.f32 -1.442695, %v1687_v27 }
0x1425   :  { %2727 = vpow2.f32 %v2065_v31 }
0x142f   :  { %v2728_v32 = vpop.eup %2727 }
0x1430   :  { %v1784_v29 = vpop.f32.mrb[20].mxu0  ;;  %v1691_v34 = vadd.f32 1.0, %v2728_v32 }
0x1431   :  { %v1785_v50 = vadd.f32 %v3092_v20, %v1784_v29  ;;  %v2444_v30 = vpop.f32.mrb[21].mxu0 }
0x1433   :  { %1795 = vrot.lane.b32.xlu1 %v1785_v50, %s2872_s22  ;;  %v2067_v59 = vmul.f32 -1.442695, %v1785_v50 }
0x1435   :  { %2729 = vpow2.f32 %v2067_v59 }
0x1436   :  { %2731 = vrcp.f32 %v1691_v34 }
0x143f   :  { %v2730_v1 = vpop.eup %2729 }
0x1440   :  { %v2732_v18 = vpop.eup %2731  ;;  %v1791_v36 = vadd.f32 1.0, %v2730_v1 }
0x1441   :  { %v1705_v49 = vsub.f32 1.0, %v2732_v18  ;;  %v1711_v52 = vmul.f32 %v2732_v18, %v1504_v19 }
0x1442   :  { %2733 = vrcp.f32 %v1791_v36 }
0x144c   :  { %v2734_v37 = vpop.eup %2733 }
0x144d   :  { %v1805_v62 = vsub.f32 1.0, %v2734_v37  ;;  %v1811_v2 = vmul.f32 %v2734_v37, %v3293_v26 }
0x1495   :  { %v1696_v60 = vpop.permute.xlu0 %1695 }
0x1496   :  { %v1698_v56 = vmul.f32 %v2732_v18, %v1696_v60 }
0x1498   :  { %1700 = vrot.lane.b32.xlu0 %v1698_v56, %s2873_s4 }
0x14a5   :  { %v1796_v38 = vpop.permute.xlu1 %1795 }
0x14a6   :  { %v1798_v39 = vmul.f32 %v2734_v37, %v1796_v38 }
0x14a8   :  { %1800 = vrot.lane.b32.xlu1 %v1798_v39, %s2873_s4 }
0x150a   :  { %v1701_v42 = vpop.permute.xlu0 %1700 }
0x150b   :  { %v1703_v43 = vadd.f32 %v1701_v42, %v1687_v27  ;;  %v114_v27 = vld [vmem:[%s3370_s7 + $0x8] sm:$0xff] }
0x150c   :  { %v2628_v29 = vpack.c.bf16 %v114_v27, %v113_v45 }
0x150d   :  { %2735 = vtanh.f32 %v1703_v43 }
0x150e   :  { %2629 = vmatpush3.bf16.msra.mxu0 %v2628_v29 }
0x150f   :  { %2630 = vmatprep.subr.bf16.mxu0 %v2869_v0 }
0x1517   :  { %v2736_v44 = vpop.eup %2735 }
0x1518   :  { %1707 = vrot.lane.b32.xlu0 %v2736_v44, %s2874_s16 }
0x151a   :  { %v1801_v46 = vpop.permute.xlu1 %1800 }
0x151b   :  { %v1803_v47 = vadd.f32 %v1801_v46, %v1785_v50  ;;  %v116_v50 = vld [vmem:[%s3370_s7 + $0x18] sm:$0xff] }
0x151c   :  { %v2631_v30 = vpack.c.bf16 %v116_v50, %v115_v28 }
0x151d   :  { %2737 = vtanh.f32 %v1803_v47 }
0x151e   :  { %2632 = vmatpush3.bf16.msra.mxu0 %v2631_v30 }
0x1527   :  { %v2738_v48 = vpop.eup %2737 }
0x1528   :  { %1807 = vrot.lane.b32.xlu1 %v2738_v48, %s2874_s16 }
0x158a   :  { %v1708_v51 = vpop.permute.xlu0 %1707 }
0x158b   :  { %v1710_v53 = vmul.f32 %v1708_v51, %v1705_v49 }
0x158d   :  { %v1712_v54 = vadd.f32 %v1711_v52, %v1710_v53 }
0x158f   :  { %1821 = vrot.lane.b32.xlu0 %v1712_v54, %s2874_s16 }
0x159a   :  { %v1808_v57 = vpop.permute.xlu1 %1807 }
0x159b   :  { %v1810_v61 = vmul.f32 %v1808_v57, %v1805_v62 }
0x159d   :  { %v3313_v3 = vadd.f32 %v1811_v2, %v1810_v61 }
0x1601   :  { %v1822_v4 = vpop.permute.xlu0 %1821 }
0x1602   :  { %v1824_v5 = vsel %vm263_vm2, %v1822_v4, %v3313_v3 }
0x1603   :  { %2462 = vmatmul.mubr.msk.f32.vlgmr.msra.gmra.mrb[16].mxu1 %vm466_vm3, %v1824_v5 }
0x16d6   :  { %v1894_v10 = vpop.f32.mrb[16].mxu1 }
0x16d7   :  { %v1895_v8 = vadd.f32 %v3092_v20, %v1894_v10  ;;  %v2463_v9 = vpop.f32.mrb[17].mxu1 }
0x16d9   :  { %1905 = vrot.lane.b32.xlu1 %v1895_v8, %s2872_s22  ;;  %v2069_v58 = vmul.f32 -1.442695, %v1895_v8 }
0x16db   :  { %2739 = vpow2.f32 %v2069_v58 }
0x16dd   :  { %568 = vperm.xlu1 %2647, %v566_v11  }
0x16e1   :  { %984 = vperm.xlu1 %2647, %v982_v12  }
0x16e5   :  { %1192 = vperm.xlu1 %2647, %v1190_v14   ;;  %v2740_v20 = vpop.eup %2739 }
0x16e6   :  { %v1901_v17 = vadd.f32 1.0, %v2740_v20 }
0x16e8   :  { %2741 = vrcp.f32 %v1901_v17 }
0x16e9   :  { %1608 = vperm.xlu1 %2647, %v1606_v13  }
0x16ed   :  { %1926 = vperm.xlu1 %2647, %v1924_v16  }
0x16f2   :  { %v2742_v19 = vpop.eup %2741 }
0x16f3   :  { %v1915_v39 = vsub.f32 1.0, %v2742_v19  ;;  %v1921_v44 = vmul.f32 %v2742_v19, %v3313_v3 }
0x174b   :  { %v1906_v21 = vpop.permute.xlu1 %1905 }
0x174c   :  { %v1908_v22 = vmul.f32 %v2742_v19, %v1906_v21 }
0x174e   :  { %1910 = vrot.lane.b32.xlu0 %v1908_v22, %s2873_s4 }
0x1752   :  { %776 = vperm.xlu0 %2648, %v774_v23  }
0x1756   :  { %1400 = vperm.xlu0 %2648, %v1398_v24  }
0x175a   :  { %1816 = vperm.xlu0 %2648, %v1814_v25  }
0x175c   :  { %v569_v32 = vpop.permute.xlu1 %568 }
0x175d   :  { %vm570_vm12 = vcmp.eq.s32.totalorder %v569_v32, 1 }
0x175e   :  { %v571_v1 = vsel %vm570_vm12, %v3115_v55, 0.0 }
0x1760   :  { %v985_v34 = vpop.permute.xlu1 %984 }
0x1761   :  { %vm986_vm14 = vcmp.eq.s32.totalorder %v985_v34, 1 }
0x1764   :  { %v1193_v56 = vpop.permute.xlu1 %1192 }
0x1765   :  { %vm1194_vm15 = vcmp.eq.s32.totalorder %v1193_v56, 1 }
0x1768   :  { %v1609_v38 = vpop.permute.xlu1 %1608 }
0x1769   :  { %vm1610_vm1 = vcmp.eq.s32.totalorder %v1609_v38, 1 }
0x176c   :  { %v1927_v55 = vpop.permute.xlu1 %1926 }
0x176d   :  { %vm1928_vm4 = vcmp.eq.s32.totalorder %v1927_v55, 1 }
0x17c0   :  { %v1911_v35 = vpop.permute.xlu0 %1910 }
0x17c1   :  { %v1913_v40 = vadd.f32 %v1911_v35, %v1895_v8 }
0x17c3   :  { %2743 = vtanh.f32 %v1913_v40 }
0x17cd   :  { %v2744_v31 = vpop.eup %2743 }
0x17ce   :  { %1917 = vrot.lane.b32.xlu0 %v2744_v31, %s2874_s16 }
0x17d1   :  { %v777_v59 = vpop.permute.xlu0 %776 }
0x17d2   :  { %vm778_vm13 = vcmp.eq.s32.totalorder %v777_v59, 1 }
0x17d3   :  { %v779_v60 = vsel %vm778_vm13, %v3150_v33, %v571_v1 }
0x17d4   :  { %v987_v36 = vsel %vm986_vm14, %v3184_v15, %v779_v60 }
0x17d5   :  { %v1401_v18 = vpop.permute.xlu0 %1400  ;;  %v1195_v37 = vsel %vm1194_vm15, %v3221_v63, %v987_v36 }
0x17d6   :  { %vm1402_vm0 = vcmp.eq.s32.totalorder %v1401_v18, 1 }
0x17d7   :  { %v1403_v42 = vsel %vm1402_vm0, %v3258_v41, %v1195_v37  ;;  %v2070_v41 = vld [vmem:[%s3371_s8] ss:$0 sm:$0xff] }
0x17d8   :  { %v1611_v33 = vsel %vm1610_vm1, %v3293_v26, %v1403_v42 }
0x17d9   :  { %v1817_v0 = vpop.permute.xlu0 %1816 }
0x17da   :  { %vm1818_vm3 = vcmp.eq.s32.totalorder %v1817_v0, 1 }
0x17db   :  { %v1819_v15 = vsel %vm1818_vm3, %v3313_v3, %v1611_v33 }
0x1840   :  { %v1918_v43 = vpop.permute.xlu0 %1917 }
0x1841   :  { %v1920_v46 = vmul.f32 %v1918_v43, %v1915_v39 }
0x1843   :  { %v1922_v47 = vadd.f32 %v1921_v44, %v1920_v46 }
0x1845   :  { %v1929_v48 = vsel %vm1928_vm4, %v1922_v47, %v1819_v15 }
0x1846   :  { %1937 = vrot.lane.b32.xlu1 %v1929_v48, %s2874_s16 }
0x18b8   :  { %v1938_v63 = vpop.permute.xlu1 %1937 }
0x18b9   :  { %2473 = vmatmul.mubr.msk.f32.vlgmr.msra.gmra.mrb[22].mxu0 %vm263_vm2, %v1938_v63 }
0x198c   :  { %v2007_v49 = vpop.f32.mrb[22].mxu0 }
0x198d   :  { %v2008_v51 = vadd.f32 %v2070_v41, %v2007_v49  ;;  %v2474_v52 = vpop.f32.mrb[23].mxu0 }
0x198f   :  { %2011 = vst [vmem:[#allocation10] sm:$0xff] %v2008_v51 }
0x1990   :  { %2844 = shalt.err (!%p2841_p8)
}
0x1991   :  { %s2845_s2 = scalar_lea.hbm %s3372_s9, 128 }
0x1992   :  { %p2846_p9 = scmp.ne.s32.totalorder %s3372_s9, %s2845_s2  ;;  %p2849_p10 = scmp.lt.u32.totalorder %s2845_s2, %s3372_s9 }
0x1994   :  { %p2851_p11 = pnand %p2849_p10, %p2846_p9 }
0x1996   :  { %2854 = shalt.err (!%p2851_p11)
}
0x1997   :  { %2021 = dma.vmem_to_hbm [thread:$0]  %s2019_s29, 128, %s3372_s9, [#allocation4]  }
0x1998   :  { %2861 = dma.done.wait [#allocation4], 128  }
0x1999   :  { %2862 = vsyncadd [#allocation4], 4294967168 }
0x199a   :  { %2025 = vsyncpa [#allocation3], 1 }
0x199b   :  { %2026 = vsyncpa [#allocation6], 1 }
0x199c   :  { %2027 = vsyncpa [#allocation9], 1 }
0x199d   :  { %2028 = vsyncpa [#allocation4], 1 }

</bundles_post_ra>
